<compile_context>
chip_gen: v6e
topology: v6e:2x2x1
jax: 0.10.0
libtpu: 0.0.40
codegen_flags: <defaults>
</compile_context>

<pallas_src>
import jax
import jax.numpy as jnp
from jax.experimental import pallas as pl
from jax.experimental.pallas import tpu as pltpu

LANE = 128

# Small demo sizes consistent with the module (n_q != n_k and dim q != dim k
# are both allowed; n_k == n_v is required).
BATCH = 4
N_Q = 8
N_K = 16
Q_DIM = 32
K_DIM = 16
V_DIM = 32
HIDDEN = 32


def _round_up(x, m):
    return ((x + m - 1) // m) * m


def _pad_last(x, target):
    pad = target - x.shape[-1]
    if pad == 0:
        return x
    cfg = [(0, 0)] * (x.ndim - 1) + [(0, pad)]
    return jnp.pad(x, cfg)


def _pad_axis(x, axis, target):
    pad = target - x.shape[axis]
    if pad == 0:
        return x
    cfg = [(0, 0)] * x.ndim
    cfg[axis] = (0, pad)
    return jnp.pad(x, cfg)


def additive_attention_kernel(q_ref, k_ref, v_ref, wq_ref, wk_ref, wv_ref, out_ref):
    """One batch-block per program.

    q_ref : (B_blk*Nq, Qp)  bf16     k_ref : (B_blk*Nk, Kp)  bf16
    v_ref : (B_blk, Nk, Vp) bf16     wq_ref: (Qp, H) bf16    wk_ref: (Kp, H) bf16
    wv_ref: (1, H) f32               out_ref: (B_blk, Nq, Vp) f32
    Qp/Kp/Vp are multiples of 128 (lane-dense); H is left unpadded (=32).
    """
    b_blk, n_k, _ = v_ref.shape
    n_q = q_ref.shape[0] // b_blk
    h = wq_ref.shape[1]

    # Projections on the MXU: bf16 operands, f32 accumulate.  Folding the
    # batch into the row dim raises the MXU M-dim from Nq to B_blk*Nq.
    qp = jnp.dot(q_ref[...], wq_ref[...], preferred_element_type=jnp.float32)
    kp = jnp.dot(k_ref[...], wk_ref[...], preferred_element_type=jnp.float32)
    qp = qp.reshape(b_blk, n_q, h)   # trivial fold: n_q multiple of 8
    kp = kp.reshape(b_blk, n_k, h)   # trivial fold: n_k multiple of 8

    # Additive features + scores (f32 tanh on the EUP; H=32 so no wasted work).
    # TODO(synk): for production-scale Nq/Nk, tile the key axis (online
    # softmax) instead of materializing (B_blk, Nq, Nk, H) feats in VMEM.
    feats = jnp.tanh(qp[:, :, None, :] + kp[:, None, :, :])    # (B_blk,Nq,Nk,H)
    # H is kept small/unpadded instead of moving this contraction onto the MXU
    # (4-D x 1-D dot_general lowering is not portable); XLU reduce over 32
    # lanes is cheap.
    scores = jnp.sum(feats * wv_ref[...], axis=-1)              # (B_blk,Nq,Nk)

    # Numerically-stable softmax over keys; divide -> EUP reciprocal.
    m = jnp.max(scores, axis=-1, keepdims=True)
    e = jnp.exp(scores - m)
    denom = jnp.sum(e, axis=-1, keepdims=True)
    attn = e * pl.reciprocal(denom, approx=True)

    # TODO(synk): training-mode dropout on `attn` is not implemented; the
    # module is evaluated in eval/inference mode where Dropout is identity.

    # Weighted sum of values on the MXU; single lane-dense store.
    out_ref[...] = jnp.einsum(
        "bqk,bkv->bqv", attn.astype(v_ref.dtype), v_ref[...],
        preferred_element_type=jnp.float32)


def additive_attention(params, queries, keys, values):
    """queries (B, Nq, Q), keys (B, Nk, K), values (B, Nk, V) -> (B, Nq, V)."""
    B, n_q, q_dim = queries.shape
    _, n_k, k_dim = keys.shape
    v_dim = values.shape[-1]
    hidden = params["W_q"].shape[1]

    qp_dim = _round_up(q_dim, LANE)
    kp_dim = _round_up(k_dim, LANE)
    vp_dim = _round_up(v_dim, LANE)

    # 2 programs keeps both v7x TensorCores busy (and only 2 cheap sequential
    # steps on single-TC v5e/v6e); fall back to 1 program if the batch or the
    # folded row counts cannot be split on (8, .) sublane tiles.
    num_programs = 1
    if B % 2 == 0 and ((B // 2) * n_q) % 8 == 0 and ((B // 2) * n_k) % 8 == 0:
        num_programs = 2
    b_blk = B // num_programs

    # bf16 MXU operands (f32 accumulate in-kernel).  Zero padding of the
    # feature dims is semantics-preserving: padded weight rows are zero, and
    # padded value columns give zero output columns we slice off.
    q2d = _pad_last(queries.astype(jnp.bfloat16), qp_dim).reshape(B * n_q, qp_dim)
    k2d = _pad_last(keys.astype(jnp.bfloat16), kp_dim).reshape(B * n_k, kp_dim)
    v_pad = _pad_last(values.astype(jnp.bfloat16), vp_dim)
    wq_pad = _pad_axis(params["W_q"].astype(jnp.bfloat16), 0, qp_dim)
    wk_pad = _pad_axis(params["W_k"].astype(jnp.bfloat16), 0, kp_dim)
    wv = params["w_v"].astype(jnp.float32).reshape(1, hidden)   # stays f32 (VPU path)

    flops = B * (2 * n_q * qp_dim * hidden          # W_q projection
                 + 2 * n_k * kp_dim * hidden        # W_k projection
                 + 4 * n_q * n_k * hidden           # add + mul + reduce for scores
                 + 2 * n_q * n_k * vp_dim)          # attn @ values
    transcendentals = B * (n_q * n_k * hidden + n_q * n_k)      # tanh + exp
    bytes_accessed = (2 * (q2d.size + k2d.size + v_pad.size + wq_pad.size + wk_pad.size)
                      + 4 * wv.size + 4 * B * n_q * vp_dim)

    out_padded = pl.pallas_call(
        additive_attention_kernel,
        out_shape=jax.ShapeDtypeStruct((B, n_q, vp_dim), jnp.float32),
        grid_spec=pltpu.PrefetchScalarGridSpec(
            num_scalar_prefetch=0,
            grid=(num_programs,),
            in_specs=[
                pl.BlockSpec((b_blk * n_q, qp_dim), lambda b: (b, 0)),
                pl.BlockSpec((b_blk * n_k, kp_dim), lambda b: (b, 0)),
                pl.BlockSpec((b_blk, n_k, vp_dim), lambda b: (b, 0, 0)),
                # Weights: constant index_map -> VMEM-resident across the grid
                # (at ~8 KiB each the extra pipeline buffer is negligible;
                # pl.Buffered(1) would halve it if HIDDEN/Q_DIM ever grow).
                pl.BlockSpec((qp_dim, hidden), lambda b: (0, 0)),
                pl.BlockSpec((kp_dim, hidden), lambda b: (0, 0)),
                pl.BlockSpec((1, hidden), lambda b: (0, 0)),
            ],
            out_specs=pl.BlockSpec((b_blk, n_q, vp_dim), lambda b: (b, 0, 0)),
        ),
        compiler_params=pltpu.CompilerParams(
            dimension_semantics=("parallel",)),
        cost_estimate=pl.CostEstimate(
            flops=int(flops),
            transcendentals=int(transcendentals),
            bytes_accessed=int(bytes_accessed)),
    )(q2d, k2d, v_pad, wq_pad, wk_pad, wv)

    return out_padded[:, :, :v_dim]


def reference_forward(params, queries, keys, values):
    """Pure-JAX f32 reference with the PyTorch module's math (eval-mode dropout)."""
    qp = jnp.einsum("bqd,dh->bqh", queries, params["W_q"])
    kp = jnp.einsum("bkd,dh->bkh", keys, params["W_k"])
    feats = jnp.tanh(qp[:, :, None, :] + kp[:, None, :, :])
    scores = jnp.einsum("bqkh,h->bqk", feats, params["w_v"])
    attn = jax.nn.softmax(scores, axis=-1)
    return jnp.einsum("bqk,bkv->bqv", attn, values)


if __name__ == "__main__":
    key = jax.random.PRNGKey(0)
    k1, k2, k3, k4, k5, k6 = jax.random.split(key, 6)

    # Weights stored as (in, out); PyTorch nn.Linear applies x @ W.T with
    # W of shape (out, in) -- identical math.
    params = {
        "W_q": jax.random.normal(k1, (Q_DIM, HIDDEN), jnp.float32) * 0.1,
        "W_k": jax.random.normal(k2, (K_DIM, HIDDEN), jnp.float32) * 0.1,
        "w_v": jax.random.normal(k3, (HIDDEN,), jnp.float32) * 0.1,
    }
    queries = jax.random.normal(k4, (BATCH, N_Q, Q_DIM), jnp.float32)
    keys = jax.random.normal(k5, (BATCH, N_K, K_DIM), jnp.float32)
    values = jax.random.normal(k6, (BATCH, N_K, V_DIM), jnp.float32)

    out = additive_attention(params, queries, keys, values)
    out = jax.block_until_ready(out)

    assert out.shape == (BATCH, N_Q, V_DIM)
    assert bool(jnp.all(jnp.isfinite(out)))

    # Tolerance reflects intentional bf16 MXU operands (f32 accumulation) and
    # the approx EUP reciprocal in the softmax normalization.
    ref = reference_forward(params, queries, keys, values)
    assert bool(jnp.allclose(out, ref, atol=2e-2, rtol=2e-2)), "mismatch vs JAX reference"

    print("KERNEL_OK")
</pallas_src>

<mosaic_0001>
module attributes {stable_mosaic.version = 11 : i64} {
  func.func @additive_attention_kernel(%arg0: i32, %arg1: memref<16x128xbf16, #tpu.memory_space<vmem>>, %arg2: memref<32x128xbf16, #tpu.memory_space<vmem>>, %arg3: memref<2x16x128xbf16, #tpu.memory_space<vmem>>, %arg4: memref<128x32xbf16, #tpu.memory_space<vmem>>, %arg5: memref<128x32xbf16, #tpu.memory_space<vmem>>, %arg6: memref<1x32xf32, #tpu.memory_space<vmem>>, %arg7: memref<2x8x128xf32, #tpu.memory_space<vmem>>) attributes {dimension_semantics = [#tpu.dimension_semantics<parallel>], iteration_bounds = array<i64: 2>, scalar_prefetch = 0 : i64, scratch_operands = 0 : i64, tpu.core_type = #tpu.core_type<tc>, window_params = [{transform_indices = @transform_0, window_bounds = array<i64: 16, 128>}, {transform_indices = @transform_1, window_bounds = array<i64: 32, 128>}, {transform_indices = @transform_2, window_bounds = array<i64: 2, 16, 128>}, {pipeline_mode = #tpu.pipeline_mode<synchronous>, transform_indices = @transform_3, window_bounds = array<i64: 128, 32>}, {pipeline_mode = #tpu.pipeline_mode<synchronous>, transform_indices = @transform_4, window_bounds = array<i64: 128, 32>}, {pipeline_mode = #tpu.pipeline_mode<synchronous>, transform_indices = @transform_5, window_bounds = array<i64: 1, 32>}, {transform_indices = @transform_6, window_bounds = array<i64: 2, 8, 128>}]} {
    %c0 = arith.constant 0 : index
    %c0_0 = arith.constant 0 : index
    %0 = vector.load %arg1[%c0, %c0_0] : memref<16x128xbf16, #tpu.memory_space<vmem>>, vector<16x128xbf16>
    %c0_1 = arith.constant 0 : index
    %c0_2 = arith.constant 0 : index
    %1 = vector.load %arg4[%c0_1, %c0_2] : memref<128x32xbf16, #tpu.memory_space<vmem>>, vector<128x32xbf16>
    %cst = arith.constant dense<0.000000e+00> : vector<16x32xf32>
    %2 = tpu.matmul %0, %1, %cst {dimension_numbers = #tpu.dot_dimension_numbers<[1], [0], [0], [1], [0, 0, 1, 1], [], []>} : vector<16x128xbf16>, vector<128x32xbf16>, vector<16x32xf32> -> vector<16x32xf32>
    %c0_3 = arith.constant 0 : index
    %c0_4 = arith.constant 0 : index
    %3 = vector.load %arg2[%c0_3, %c0_4] : memref<32x128xbf16, #tpu.memory_space<vmem>>, vector<32x128xbf16>
    %c0_5 = arith.constant 0 : index
    %c0_6 = arith.constant 0 : index
    %4 = vector.load %arg5[%c0_5, %c0_6] : memref<128x32xbf16, #tpu.memory_space<vmem>>, vector<128x32xbf16>
    %cst_7 = arith.constant dense<0.000000e+00> : vector<32x32xf32>
    %5 = tpu.matmul %3, %4, %cst_7 {dimension_numbers = #tpu.dot_dimension_numbers<[1], [0], [0], [1], [0, 0, 1, 1], [], []>} : vector<32x128xbf16>, vector<128x32xbf16>, vector<32x32xf32> -> vector<32x32xf32>
    %6 = vector.shape_cast %2 : vector<16x32xf32> to vector<2x8x32xf32>
    %7 = vector.shape_cast %5 : vector<32x32xf32> to vector<2x16x32xf32>
    %8 = vector.shape_cast %6 : vector<2x8x32xf32> to vector<2x8x1x32xf32>
    %9 = vector.shape_cast %7 : vector<2x16x32xf32> to vector<2x1x16x32xf32>
    %10 = vector.broadcast %8 : vector<2x8x1x32xf32> to vector<2x8x16x32xf32>
    %11 = vector.broadcast %9 : vector<2x1x16x32xf32> to vector<2x8x16x32xf32>
    %12 = arith.addf %10, %11 : vector<2x8x16x32xf32>
    %13 = math.tanh %12 : vector<2x8x16x32xf32>
    %c0_8 = arith.constant 0 : index
    %c0_9 = arith.constant 0 : index
    %14 = vector.load %arg6[%c0_8, %c0_9] : memref<1x32xf32, #tpu.memory_space<vmem>>, vector<1x32xf32>
    %15 = vector.shape_cast %14 : vector<1x32xf32> to vector<1x1x1x32xf32>
    %16 = vector.broadcast %15 : vector<1x1x1x32xf32> to vector<2x8x16x32xf32>
    %17 = arith.mulf %13, %16 : vector<2x8x16x32xf32>
    %cst_10 = arith.constant dense<0.000000e+00> : vector<2x8x16xf32>
    %18 = vector.multi_reduction <add>, %17, %cst_10 [3] : vector<2x8x16x32xf32> to vector<2x8x16xf32>
    %cst_11 = arith.constant dense<0xFF800000> : vector<2x8xf32>
    %19 = vector.multi_reduction <maximumf>, %18, %cst_11 [2] : vector<2x8x16xf32> to vector<2x8xf32>
    %20 = vector.shape_cast %19 : vector<2x8xf32> to vector<2x8x1xf32>
    %21 = vector.broadcast %20 : vector<2x8x1xf32> to vector<2x8x16xf32>
    %22 = arith.subf %18, %21 : vector<2x8x16xf32>
    %23 = math.exp %22 : vector<2x8x16xf32>
    %cst_12 = arith.constant dense<0.000000e+00> : vector<2x8xf32>
    %24 = vector.multi_reduction <add>, %23, %cst_12 [2] : vector<2x8x16xf32> to vector<2x8xf32>
    %25 = vector.shape_cast %24 : vector<2x8xf32> to vector<2x8x1xf32>
    %26 = tpu.reciprocal %25 {approx = true} : vector<2x8x1xf32> -> vector<2x8x1xf32>
    %27 = vector.broadcast %26 : vector<2x8x1xf32> to vector<2x8x16xf32>
    %28 = arith.mulf %23, %27 : vector<2x8x16xf32>
    %29 = arith.truncf %28 : vector<2x8x16xf32> to vector<2x8x16xbf16>
    %c0_13 = arith.constant 0 : index
    %c0_14 = arith.constant 0 : index
    %c0_15 = arith.constant 0 : index
    %30 = vector.load %arg3[%c0_13, %c0_14, %c0_15] : memref<2x16x128xbf16, #tpu.memory_space<vmem>>, vector<2x16x128xbf16>
    "tpu.trace_start"() <{level = 10 : i32, message = "bqk,bkv->bqv"}> : () -> ()
    %cst_16 = arith.constant dense<0.000000e+00> : vector<2x8x128xf32>
    %31 = tpu.matmul %29, %30, %cst_16 {dimension_numbers = #tpu.dot_dimension_numbers<[2], [1], [1], [2], [0, 0, 0, 1, 1, 2], [0], [0]>} : vector<2x8x16xbf16>, vector<2x16x128xbf16>, vector<2x8x128xf32> -> vector<2x8x128xf32>
    "tpu.trace_stop"() : () -> ()
    %c0_17 = arith.constant 0 : index
    %c0_18 = arith.constant 0 : index
    %c0_19 = arith.constant 0 : index
    %32 = vector.load %arg7[%c0_17, %c0_18, %c0_19] : memref<2x8x128xf32, #tpu.memory_space<vmem>>, vector<2x8x128xf32>
    tpu.vector_store %arg7[%c0_17, %c0_18, %c0_19], %31 {strides = array<i32>} : memref<2x8x128xf32, #tpu.memory_space<vmem>>, vector<2x8x128xf32>,
    return
  }
  func.func @transform_0(%arg0: i32) -> (i32, i32) {
    %c0_i32 = arith.constant 0 : i32
    %c0_i32_0 = arith.constant 0 : i32
    return %arg0, %c0_i32 : i32, i32
  }
  func.func @transform_1(%arg0: i32) -> (i32, i32) {
    %c0_i32 = arith.constant 0 : i32
    %c0_i32_0 = arith.constant 0 : i32
    return %arg0, %c0_i32 : i32, i32
  }
  func.func @transform_2(%arg0: i32) -> (i32, i32, i32) {
    %c0_i32 = arith.constant 0 : i32
    %c0_i32_0 = arith.constant 0 : i32
    %c0_i32_1 = arith.constant 0 : i32
    return %arg0, %c0_i32, %c0_i32_0 : i32, i32, i32
  }
  func.func @transform_3(%arg0: i32) -> (i32, i32) {
    %c0_i32 = arith.constant 0 : i32
    %c0_i32_0 = arith.constant 0 : i32
    %c0_i32_1 = arith.constant 0 : i32
    return %c0_i32, %c0_i32_0 : i32, i32
  }
  func.func @transform_4(%arg0: i32) -> (i32, i32) {
    %c0_i32 = arith.constant 0 : i32
    %c0_i32_0 = arith.constant 0 : i32
    %c0_i32_1 = arith.constant 0 : i32
    return %c0_i32, %c0_i32_0 : i32, i32
  }
  func.func @transform_5(%arg0: i32) -> (i32, i32) {
    %c0_i32 = arith.constant 0 : i32
    %c0_i32_0 = arith.constant 0 : i32
    %c0_i32_1 = arith.constant 0 : i32
    return %c0_i32, %c0_i32_0 : i32, i32
  }
  func.func @transform_6(%arg0: i32) -> (i32, i32, i32) {
    %c0_i32 = arith.constant 0 : i32
    %c0_i32_0 = arith.constant 0 : i32
    %c0_i32_1 = arith.constant 0 : i32
    return %arg0, %c0_i32, %c0_i32_0 : i32, i32, i32
  }
}

</mosaic_0001>

<bundles_post_ra>
// kernel: tpu_custom_call.1
= control target key start
LH: loop header
LB: loop body
LE: loop exit
PB: predicated region body
PF: predicated region fallthrough
CT: control target
= control target key end

     0   :  { %11 = vsyncpa [#allocation3], 0  ;;  %s3568_s0 = inlined_call_operand.vmem [shape: bf16[32,128], index: 0, kind: input, shape index: {}]   ;;  %s3569_s1 = inlined_call_operand.vmem [shape: bf16[64,128], index: 1, kind: input, shape index: {}]   ;;  %s3570_s2 = inlined_call_operand.vmem [shape: bf16[4,16,128], index: 2, kind: input, shape index: {}]   ;;  %s3571_s3 = inlined_call_operand.vmem [shape: bf16[128,32], index: 3, kind: input, shape index: {}]   ;;  %s3572_s4 = inlined_call_operand.vmem [shape: bf16[128,32], index: 4, kind: input, shape index: {}]   ;;  %s3573_s5 = inlined_call_operand.vmem [shape: f32[1,32], index: 5, kind: input, shape index: {}]   ;;  %s3574_s6 = inlined_call_operand.hbm [shape: f32[4,8,128], index: 6, kind: output, shape index: {}]  }
   0x1   :  { %13 = vsyncpa [#allocation3 + $0x1], 0  ;;  %s2667_s21 = smov 0   ;;  %s2669_s22 = smov 0  }
   0x2   :  { %s2671_s23 = smov 0   ;;  %s2673_s24 = smov 0  }
   0x3 LB: > { %s2688_s25 = sadd.s32 4294967295, %s2623_s24   ;;  %s2245_s26 = sadd.s32 4294967294, %s2623_s24   ;;  %s2623_s24 = sphi %s2673_s24, %s3586_s24   ;;  %s2619_s23 = sphi %s2671_s23, %s3585_s23   ;;  %s2615_s22 = sphi %s2669_s22, %s3584_s22   ;;  %s2611_s21 = sphi %s2667_s21, %s3583_s21  }
   0x4   : > { %s2692_s27 = sadd.s32 1, %s2623_s24   ;;  %s167_s28 = sadd.s32 1, %s2619_s23 }
   0x5   : > { %s164_s29 = ssub.s32 %s2623_s24, %s2692_s27  ;;  %p177_p0 = scmp.ne.s32.totalorder %s2619_s23, %s2615_s22 }
   0x6   : > { %p165_p1 = scmp.eq.s32.totalorder %s164_s29, 0  ;;  %p178_p2 = scmp.eq.s32.totalorder %s2688_s25, 1 }
   0x7   : > { %p183_p3 = scmp.ne.s32.totalorder %s2615_s22, %s2611_s21  ;;  %p184_p4 = scmp.eq.s32.totalorder %s2245_s26, 1 }
   0x8   : > { %s2703_s30 = scalar_select %p165_p1, %s2619_s23, %s167_s28  }
   0x9   : > { %p2705_p5 = por %p178_p2, %p177_p0  ;;  %p2709_p6 = por %p184_p4, %p183_p3 }
   0xa   : > { %p2248_p7 = scmp.ge.s32.totalorder %s2623_s24, 1  ;;  %p239_p8 = scmp.lt.s32.totalorder %s2623_s24, 3 }
   0xc   : > { %p240_p9 = pnand %p2248_p7, %p239_p8 }
   0xe   : > { %243 = sbr.rel (%p240_p9) target bundleno = 1355 (0x54b), region = 44 }
  0x13   : > { %v2410_v0 = vld [vmem:[%s3571_s3 + $0x38] sm:$0xff]   ;;  %v2625_v1 = vmov 0.0   ;;  %v2412_v3 = vld [vmem:[%s3571_s3 + $0x30] sm:$0xff]   ;;  %vm2626_vm0 = vmmov 0   ;;  %s2250_s15 = sshll.u32 %s2688_s25, 1  ;;  %s2252_s18 = sshll.u32 %s2688_s25, 2  ;;  %v549_v22 = vlaneseq }
  0x14   : > { %2311 = vmatprep.subr.bf16.mxu0 %v2625_v1  ;;  %v2411_v2 = vld [vmem:[%s3572_s4 + $0x38] sm:$0xff]   ;;  %2327 = vmatprep.mubr.msk.bf16.mxu0 %vm2626_vm0, %v2625_v1  ;;  %v2413_v4 = vld [vmem:[%s3572_s4 + $0x30] sm:$0xff]   ;;  %p281_p10 = scmp.lt.s32.totalorder %s2250_s15, 3  ;;  %v2415_v5 = vld [vmem:[%s3572_s4 + $0x28] sm:$0xff]   ;;  %p287_p11 = scmp.lt.s32.totalorder %s2252_s18, 7  ;;  %vm826_vm1 = vcmask 261120  }
  0x15   : > { %2312 = vmatpush3.bf16.msra.mxu0 %v2410_v0  ;;  %2331 = vmatprep.subr.bf16.mxu1 %v2411_v2  ;;  %v2414_v6 = vld [vmem:[%s3571_s3 + $0x28] sm:$0xff]   ;;  %v2417_v7 = vld [vmem:[%s3572_s4 + $0x20] sm:$0xff]   ;;  %v2419_v9 = vld [vmem:[%s3572_s4 + $0x18] sm:$0xff]   ;;  %v2627_v20 = vmov 1966171168   ;;  %v2793_v24 = vshrl.u32 %v549_v22, 7 }
  0x16   : > { %2313 = vmatprep.subr.bf16.mxu0 %v2625_v1  ;;  %2332 = vmatpush3.bf16.msra.mxu1 %v2411_v2  ;;  %s3588_s15 = smov (!%p281_p10, %s2250_s15), 3  ;;  %v2416_v8 = vld [vmem:[%s3571_s3 + $0x20] sm:$0xff]   ;;  %s3590_s18 = smov (!%p287_p11, %s2252_s18), 7  ;;  %v2418_v10 = vld [vmem:[%s3571_s3 + $0x18] sm:$0xff]   ;;  %v2421_v11 = vld [vmem:[%s3572_s4 + $0x10] sm:$0xff]   ;;  %v547_v21 = vunpack.c.l.s4 %v2627_v20  ;;  %vm966_vm2 = vcmask 130112  }
  0x17   : > { %2333 = vmatprep.subr.bf16.mxu1 %v2413_v4  ;;  %s2251_s12 = sshll.u32 %s3588_s15, 2  ;;  %s2253_s13 = sshll.u32 %s3590_s18, 2  ;;  %v2420_v13 = vld [vmem:[%s3571_s3 + $0x10] sm:$0xff]   ;;  %v2423_v14 = vld [vmem:[%s3572_s4 + $0x8] sm:$0xff]   ;;  %v2425_v16 = vld [vmem:[%s3572_s4] sm:$0xff]   ;;  %v2801_v30 = vsub.s32 0, %v2793_v24 }
  0x18   : > { %s290_s28 = scalar_lea.vmem %s3569_s1, %s2253_s13  ;;  %s284_s18 = scalar_lea.vmem %s3568_s0, %s2251_s12  ;;  %v2422_v15 = vld [vmem:[%s3571_s3 + $0x8] sm:$0xff]   ;;  %v2424_v17 = vld [vmem:[%s3571_s3] sm:$0xff]   ;;  %v548_v23 = vunpack.c.0.s8 %v547_v21  ;;  %vm1103_vm3 = vcmask 1041409   ;;  %vm1105_vm4 = vcmask 1042434   ;;  %vm1107_vm5 = vcmask 1043459  }
  0x19   : > { %2314 = vmatpush3.bf16.msra.mxu0 %v2412_v3  ;;  %s2286_s10 = sshll.u32 %s3588_s15, 3  ;;  %v2427_v12 = vld [vmem:[%s290_s28] sm:$0xff]   ;;  %v2428_v19 = vld [vmem:[%s290_s28 + $0x8] sm:$0xff]   ;;  %vm1109_vm6 = vcmask 1044484   ;;  %vm1111_vm7 = vcmask 1045509   ;;  %vm1113_vm8 = vcmask 1046534  }
  0x1a   : > { %2315 = vmatprep.subr.bf16.mxu0 %v2625_v1  ;;  %2334 = vmatpush3.bf16.msra.mxu1 %v2413_v4  ;;  %s2769_s20 = scalar_lea.vmem %s3570_s2, %s2286_s10  ;;  %v2426_v18 = vld [vmem:[%s284_s18] sm:$0xff]   ;;  %v2796_v25 = vsub.s32 %v548_v23, %v2793_v24  ;;  %vm1115_vm9 = vcmask 1047559   ;;  %vm1126_vm10 = vcmask 130048   ;;  %s277_s16 = sand.u32 1, %s2615_s22  }
  0x1b   : > { %2335 = vmatprep.subr.bf16.mxu1 %v2415_v5  ;;  %2347 = vmatprep.mubr.bf16.mxu1 %v2427_v12  ;;  %v2846_v0 = vld [vmem:[%s3573_s5] ss:$0 sm:$0xff]  ;;  %s2249_s17 = sshll.u32 %s277_s16, 4  ;;  %s3528_s29 = scalar_lea.sflag [#allocation3], %s277_s16 }
  0x1c   : > { %s279_s13 = scalar_lea.vmem [#allocation2], %s2249_s17 }
  0x1d   : > { %2316 = vmatpush3.bf16.msra.mxu0 %v2414_v6  ;;  %s2159_s19 = sshll.u32 %s279_s13, 4  ;;  %s3521_s19 = int_to_ptr.vmem [resolvable:$true] %s2159_s19 }
  0x1e   : > { %2317 = vmatprep.subr.bf16.mxu0 %v2625_v1  ;;  %2336 = vmatpush3.bf16.msra.mxu1 %v2415_v5  ;;  %s2563_s9 = scalar_lea.vmem %s3521_s19, 256 }
  0x1f   : > { %2337 = vmatprep.subr.bf16.mxu1 %v2417_v7  ;;  %p2564_p12 = scmp.ne.s32.totalorder %s3521_s19, %s2563_s9 }
  0x21   : > { %2318 = vmatpush3.bf16.msra.mxu0 %v2416_v8  ;;  %p2565_p13 = pnand %p2564_p12, %p2705_p5 }
  0x22   : > { %2319 = vmatprep.subr.bf16.mxu0 %v2625_v1  ;;  %2338 = vmatpush3.bf16.msra.mxu1 %v2417_v7 }
  0x23   : > { %2339 = vmatprep.subr.bf16.mxu1 %v2419_v9  ;;  %p2566_p0 = pneg %p2565_p13 }
  0x25   : > { %2320 = vmatpush3.bf16.msra.mxu0 %v2418_v10 }
  0x26   : > { %2321 = vmatprep.subr.bf16.mxu0 %v2625_v1  ;;  %2340 = vmatpush3.bf16.msra.mxu1 %v2419_v9 }
  0x27   : > { %2341 = vmatprep.subr.bf16.mxu1 %v2421_v11 }
  0x29   : > { %2322 = vmatpush3.bf16.msra.mxu0 %v2420_v13 }
  0x2a   : > { %2323 = vmatprep.subr.bf16.mxu0 %v2625_v1  ;;  %2342 = vmatpush3.bf16.msra.mxu1 %v2421_v11 }
  0x2b   : > { %2343 = vmatprep.subr.bf16.mxu1 %v2423_v14 }
  0x2d   : > { %2324 = vmatpush3.bf16.msra.mxu0 %v2422_v15 }
  0x2e   : > { %2325 = vmatprep.subr.bf16.mxu0 %v2625_v1  ;;  %2344 = vmatpush3.bf16.msra.mxu1 %v2423_v14 }
  0x2f   : > { %2345 = vmatprep.subr.bf16.mxu1 %v2425_v16 }
  0x31   : > { %2326 = vmatpush3.bf16.msra.mxu0 %v2424_v17 }
  0x32   : > { %2351 = vmatprep.subr.bf16.mxu0 %v2625_v1  ;;  %2346 = vmatpush3.bf16.msra.mxu1 %v2425_v16 }
  0x33   : > { %2357 = vmatprep.subr.bf16.mxu1 %v2625_v1 }
  0x34   : > { %2328 = vmatmul.mubr.bf16.vlgmr.msra.gmra.mxu0 %v2426_v18 }
  0x35   : > { %2353 = vmatprep.mubr.msk.bf16.mxu0 %vm2626_vm0, %v2625_v1  ;;  %2348 = vmatmul.mubr.bf16.vlgmr.msra.gmra.mxu1 %v2428_v19 }
  0x36   : > { %2359 = vmatprep.mubr.msk.bf16.mxu1 %vm2626_vm0, %v2625_v1 }
  0xf4   : > { %v407_v26 = vpop.f32.mrf.mxu0 }
  0xf5   : > { %v552_v27 = vrot.slane %v407_v26, %v2796_v25  ;;  %v2803_v32 = vpop.f32.mrf.mxu1  ;;  %v545_v38 = vcombine.high %v407_v26, %v407_v26 }
  0xf6   : > { %v2329_v28 = vpop.f32.mrf.mxu0 }
  0xf7   : > { %v568_v29 = vrot.slane %v552_v27, %v2796_v25  ;;  %v560_v37 = vcombine.high %v552_v27, %v552_v27  ;;  %v2807_v39 = vpop.f32.mrf.mxu1  ;;  %v559_v46 = vrot.slane %v545_v38, %v2796_v25 }
  0xf8   : > { %v410_v31 = vpop.f32.mrf.mxu0 }
  0xf9   : > { %v594_v33 = vcombine.high %v410_v31, %v410_v31  ;;  %v646_v35 = vrot.slane %v568_v29, %v2801_v30  ;;  %v582_v45 = vrot.slane %v560_v37, %v2796_v25  ;;  %v2821_v49 = vpop.f32.mrf.mxu1  ;;  %v590_v50 = vcombine.high %v568_v29, %v568_v29 }
  0xfa   : > { %v2330_v34 = vpop.f32.mrf.mxu0  ;;  %v575_v53 = vrot.slane %v559_v46, %v2796_v25  ;;  %v601_v54 = vrot.slane %v410_v31, %v2796_v25  ;;  %v561_v2 = vcombine.high %v559_v46, %v559_v46 }
  0xfb   : > { %v608_v36 = vrot.slane %v594_v33, %v2796_v25  ;;  %v723_v42 = vadd.f32 %v646_v35, %v2807_v39  ;;  %v650_v52 = vrot.slane %v582_v45, %v2801_v30  ;;  %v2833_v57 = vpop.f32.mrf.mxu1  ;;  %v654_v58 = vrot.slane %v590_v50, %v2801_v30 }
  0xfc   : > { %v662_v60 = vrot.slane %v575_v53, %v2801_v30  ;;  %v2839_v61 = vrot.slane %v601_v54, %v2796_v25  ;;  %v724_v62 = vadd.f32 %v646_v35, %v2833_v57  ;;  %v592_v5 = vcombine.high %v582_v45, %v582_v45 }
  0xfd   : > { %v610_v40 = vcombine.high %v608_v36, %v608_v36  ;;  %v2810_v41 = vrot.slane %v608_v36, %v2796_v25  ;;  %2431 = vtanh.f32 %v723_v42  ;;  %v725_v59 = vadd.f32 %v650_v52, %v2807_v39 }
  0xfe   : > { %v726_v63 = vadd.f32 %v650_v52, %v2833_v57  ;;  %v727_v1 = vadd.f32 %v654_v58, %v2807_v39  ;;  %v728_v3 = vadd.f32 %v654_v58, %v2833_v57  ;;  %v678_v6 = vrot.slane %v2839_v61, %v2801_v30 }
  0xff   : > { %v638_v43 = vrot.slane %v610_v40, %v2796_v25  ;;  %v640_v44 = vcombine.high %v2810_v41, %v2810_v41  ;;  %v731_v7 = vadd.f32 %v662_v60, %v2807_v39  ;;  %v732_v10 = vadd.f32 %v662_v60, %v2833_v57 }
 0x100   : > { %v2857_v11 = vrot.slane %v561_v2, %v2796_v25  ;;  %v658_v12 = vrot.slane %v592_v5, %v2801_v30  ;;  %v739_v13 = vadd.f32 %v2803_v32, %v678_v6  ;;  %v591_v14 = vcombine.high %v575_v53, %v575_v53 }
 0x101   : > { %v642_v47 = vcombine.high %v638_v43, %v638_v43  ;;  %v2819_v48 = vrot.slane %v640_v44, %v2801_v30  ;;  %v609_v15 = vcombine.high %v601_v54, %v601_v54  ;;  %v740_v16 = vadd.f32 %v2821_v49, %v678_v6 }
 0x102   : > { %v666_v17 = vrot.slane %v2857_v11, %v2801_v30  ;;  %v729_v18 = vadd.f32 %v658_v12, %v2807_v39  ;;  %v670_v20 = vrot.slane %v591_v14, %v2801_v30  ;;  %v2870_v26 = vrot.slane %v638_v43, %v2801_v30 }
 0x103   : > { %v2824_v51 = vrot.slane %v642_v47, %v2801_v30  ;;  %v751_v56 = vadd.f32 %v2803_v32, %v2819_v48  ;;  %v2867_v21 = vrot.slane %v609_v15, %v2796_v25  ;;  %v730_v27 = vadd.f32 %v658_v12, %v2833_v57 }
 0x104   : > { %v733_v31 = vadd.f32 %v666_v17, %v2807_v39  ;;  %v639_v25 = vcombine.high %v2839_v61, %v2839_v61  ;;  %v734_v36 = vadd.f32 %v666_v17, %v2833_v57  ;;  %v735_v43 = vadd.f32 %v670_v20, %v2807_v39 }
 0x105   : > { %v753_v55 = vadd.f32 %v2803_v32, %v2824_v51  ;;  %2433 = vtanh.f32 %v751_v56  ;;  %v682_v40 = vrot.slane %v2867_v21, %v2801_v30  ;;  %v750_v50 = vadd.f32 %v2821_v49, %v2870_v26 }
 0x106   : > { %v754_v58 = vadd.f32 %v2821_v49, %v2824_v51 }
 0x107   : > { %2435 = vtanh.f32 %v753_v55  ;;  %v752_v55 = vadd.f32 %v2821_v49, %v2819_v48 }
 0x108   : > { %2437 = vtanh.f32 %v725_v59  ;;  %v686_v59 = vrot.slane %v639_v25, %v2801_v30 }
 0x109   : > { %2439 = vtanh.f32 %v724_v62  ;;  %v736_v62 = vadd.f32 %v670_v20, %v2833_v57 }
 0x10a   : > { %v2432_v4 = vpop.eup %2431  ;;  %2441 = vtanh.f32 %v726_v63 }
 0x10b   : > { %v794_v8 = vmul.f32 %v2432_v4, %v2846_v0  ;;  %2443 = vtanh.f32 %v727_v1  ;;  %v741_v1 = vadd.f32 %v2803_v32, %v682_v40  ;;  %v694_v4 = vrot.slane %v2810_v41, %v2801_v30 }
 0x10c   : > { %2445 = vtanh.f32 %v728_v3  ;;  %v593_v3 = vcombine.high %v2857_v11, %v2857_v11 }
 0x10d   : > { %v827_v9 = vsel %vm826_vm1, %v794_v8, 0.0  ;;  %2447 = vtanh.f32 %v731_v7  ;;  %v742_v7 = vadd.f32 %v2821_v49, %v682_v40 }
 0x10e   : > { %828 = vadd.xlane.f32.xlu0 %v827_v9  ;;  %2449 = vtanh.f32 %v732_v10  ;;  %v743_v9 = vadd.f32 %v2803_v32, %v686_v59  ;;  %v674_v41 = vrot.slane %v593_v3, %v2801_v30 }
 0x10f   : > { %2451 = vtanh.f32 %v739_v13  ;;  %v641_v13 = vcombine.high %v2867_v21, %v2867_v21 }
 0x110   : > { %2453 = vtanh.f32 %v740_v16  ;;  %v744_v16 = vadd.f32 %v2821_v49, %v686_v59 }
 0x111   : > { %2455 = vtanh.f32 %v729_v18  ;;  %v747_v18 = vadd.f32 %v2803_v32, %v694_v4  ;;  %v690_v21 = vrot.slane %v641_v13, %v2801_v30 }
 0x112   : > { %v2434_v19 = vpop.eup %2433  ;;  %2457 = vtanh.f32 %v730_v27 }
 0x113   : > { %v822_v28 = vmul.f32 %v2434_v19, %v2846_v0  ;;  %2459 = vtanh.f32 %v733_v31 }
 0x114   : > { %v2436_v23 = vpop.eup %2435  ;;  %2461 = vtanh.f32 %v734_v36  ;;  %v737_v36 = vadd.f32 %v674_v41, %v2807_v39 }
 0x115   : > { %v2438_v29 = vpop.eup %2437  ;;  %v824_v33 = vmul.f32 %v2436_v23, %v2846_v0  ;;  %v2881_v37 = vsel %vm826_vm1, %v822_v28, 0.0  ;;  %2463 = vtanh.f32 %v735_v43  ;;  %v748_v28 = vadd.f32 %v2821_v49, %v694_v4 }
 0x116   : > { %v2440_v34 = vpop.eup %2439  ;;  %v796_v35 = vmul.f32 %v2438_v29, %v2846_v0  ;;  %2465 = vtanh.f32 %v750_v50  ;;  %v745_v43 = vadd.f32 %v2803_v32, %v690_v21 }
 0x117   : > { %v2442_v38 = vpop.eup %2441  ;;  %v795_v42 = vmul.f32 %v2440_v34, %v2846_v0  ;;  %v2888_v44 = vsel %vm826_vm1, %v824_v33, 0.0  ;;  %2467 = vtanh.f32 %v752_v55 }
 0x118   : > { %v2444_v45 = vpop.eup %2443  ;;  %v833_v46 = vsel %vm826_vm1, %v796_v35, 0.0  ;;  %v797_v47 = vmul.f32 %v2442_v38, %v2846_v0  ;;  %2469 = vtanh.f32 %v754_v58 }
 0x119   : > { %v2446_v52 = vpop.eup %2445  ;;  %834 = vadd.xlane.f32.xlu1 %v833_v46  ;;  %v830_v53 = vsel %vm826_vm1, %v795_v42, 0.0  ;;  %v798_v54 = vmul.f32 %v2444_v45, %v2846_v0  ;;  %2471 = vtanh.f32 %v736_v62  ;;  %v738_v45 = vadd.f32 %v674_v41, %v2833_v57 }
 0x11a   : > { %v2448_v56 = vpop.eup %2447  ;;  %831 = vadd.xlane.f32.xlu0 %v830_v53  ;;  %v836_v60 = vsel %vm826_vm1, %v797_v47, 0.0  ;;  %v799_v61 = vmul.f32 %v2446_v52, %v2846_v0  ;;  %2473 = vtanh.f32 %v741_v1 }
 0x11b   : > { %v2450_v63 = vpop.eup %2449  ;;  %v839_v48 = vsel %vm826_vm1, %v798_v54, 0.0  ;;  %v802_v2 = vmul.f32 %v2448_v56, %v2846_v0  ;;  %2475 = vtanh.f32 %v742_v7 }
 0x11c   : > { %v2452_v51 = vpop.eup %2451  ;;  %v842_v5 = vsel %vm826_vm1, %v799_v61, 0.0  ;;  %v803_v6 = vmul.f32 %v2450_v63, %v2846_v0  ;;  %2477 = vtanh.f32 %v743_v9  ;;  %v746_v61 = vadd.f32 %v2821_v49, %v690_v21 }
 0x11d   : > { %837 = vadd.xlane.f32.xlu1 %v836_v60  ;;  %v2454_v8 = vpop.eup %2453  ;;  %v851_v10 = vsel %vm826_vm1, %v802_v2, 0.0  ;;  %v810_v12 = vmul.f32 %v2452_v51, %v2846_v0  ;;  %2479 = vtanh.f32 %v744_v16  ;;  %v749_v63 = vadd.f32 %v2803_v32, %v2870_v26 }
 0x11e   : > { %840 = vadd.xlane.f32.xlu0 %v839_v48  ;;  %v2456_v11 = vpop.eup %2455  ;;  %v854_v14 = vsel %vm826_vm1, %v803_v6, 0.0  ;;  %v811_v15 = vmul.f32 %v2454_v8, %v2846_v0  ;;  %2481 = vtanh.f32 %v747_v18 }
 0x11f   : > { %v2458_v17 = vpop.eup %2457  ;;  %v875_v19 = vsel %vm826_vm1, %v810_v12, 0.0  ;;  %v800_v20 = vmul.f32 %v2456_v11, %v2846_v0  ;;  %2483 = vtanh.f32 %v748_v28 }
 0x120   : > { %v2460_v23 = vpop.eup %2459  ;;  %v878_v31 = vsel %vm826_vm1, %v811_v15, 0.0  ;;  %v801_v33 = vmul.f32 %v2458_v17, %v2846_v0  ;;  %2485 = vtanh.f32 %v737_v36 }
 0x121   : > { %843 = vadd.xlane.f32.xlu1 %v842_v5  ;;  %v2462_v27 = vpop.eup %2461  ;;  %v845_v25 = vsel %vm826_vm1, %v800_v20, 0.0  ;;  %v804_v35 = vmul.f32 %v2460_v23, %v2846_v0  ;;  %2487 = vtanh.f32 %v738_v45 }
 0x122   : > { %852 = vadd.xlane.f32.xlu0 %v851_v10  ;;  %v2464_v29 = vpop.eup %2463  ;;  %v848_v47 = vsel %vm826_vm1, %v801_v33, 0.0  ;;  %v805_v50 = vmul.f32 %v2462_v27, %v2846_v0  ;;  %2489 = vtanh.f32 %v745_v43 }
 0x123   : > { %v2466_v34 = vpop.eup %2465  ;;  %v857_v54 = vsel %vm826_vm1, %v804_v35, 0.0  ;;  %v806_v55 = vmul.f32 %v2464_v29, %v2846_v0  ;;  %2491 = vtanh.f32 %v746_v61 }
 0x124   : > { %v2468_v38 = vpop.eup %2467  ;;  %v821_v40 = vmul.f32 %v2466_v34, %v2846_v0  ;;  %v860_v59 = vsel %vm826_vm1, %v805_v50, 0.0  ;;  %2493 = vtanh.f32 %v749_v63  ;;  %v956_v50 = vand.u32 127, %v549_v22 }
 0x125   : > { %855 = vadd.xlane.f32.xlu1 %v854_v14  ;;  %v2470_v42 = vpop.eup %2469  ;;  %v823_v46 = vmul.f32 %v2468_v38, %v2846_v0  ;;  %v863_v1 = vsel %vm826_vm1, %v806_v55, 0.0 }
 0x126   : > { %876 = vadd.xlane.f32.xlu0 %v875_v19  ;;  %v2940_v52 = vsel %vm826_vm1, %v821_v40, 0.0  ;;  %v825_v39 = vmul.f32 %v2470_v42, %v2846_v0  ;;  %v2472_v53 = vpop.eup %2471 }
 0x127   : > { %v914_v57 = vsel %vm826_vm1, %v823_v46, 0.0  ;;  %v2474_v56 = vpop.eup %2473  ;;  %v807_v60 = vmul.f32 %v2472_v53, %v2846_v0 }
 0x128   : > { %v920_v58 = vsel %vm826_vm1, %v825_v39, 0.0  ;;  %v2476_v62 = vpop.eup %2475  ;;  %v812_v48 = vmul.f32 %v2474_v56, %v2846_v0  ;;  %v961_v39 = vadd.s32 4294967288, %v956_v50  ;;  %v3020_v56 = vsub.s32 %v956_v50, %v2793_v24 }
 0x129   : > { %879 = vadd.xlane.f32.xlu1 %v878_v31  ;;  %v2478_v2 = vpop.eup %2477  ;;  %v866_v51 = vsel %vm826_vm1, %v807_v60, 0.0  ;;  %v813_v3 = vmul.f32 %v2476_v62, %v2846_v0 }
 0x12a   : > { %846 = vadd.xlane.f32.xlu0 %v845_v25  ;;  %v2480_v4 = vpop.eup %2479  ;;  %v881_v49 = vsel %vm826_vm1, %v812_v48, 0.0  ;;  %v814_v32 = vmul.f32 %v2478_v2, %v2846_v0  ;;  %v3015_v55 = vsub.s32 %v961_v39, %v2793_v24 }
 0x12b   : > { %v2482_v26 = vpop.eup %2481  ;;  %v884_v6 = vsel %vm826_vm1, %v813_v3, 0.0  ;;  %v815_v7 = vmul.f32 %v2480_v4, %v2846_v0 }
 0x12c   : > { %v2484_v5 = vpop.eup %2483  ;;  %v887_v8 = vsel %vm826_vm1, %v814_v32, 0.0  ;;  %v818_v9 = vmul.f32 %v2482_v26, %v2846_v0 }
 0x12d   : > { %849 = vadd.xlane.f32.xlu1 %v848_v47  ;;  %v2486_v10 = vpop.eup %2485  ;;  %v890_v12 = vsel %vm826_vm1, %v815_v7, 0.0  ;;  %v819_v11 = vmul.f32 %v2484_v5, %v2846_v0 }
 0x12e   : > { %858 = vadd.xlane.f32.xlu0 %v857_v54  ;;  %v2488_v41 = vpop.eup %2487  ;;  %v899_v13 = vsel %vm826_vm1, %v818_v9, 0.0  ;;  %v808_v14 = vmul.f32 %v2486_v10, %v2846_v0 }
 0x12f   : > { %v2490_v15 = vpop.eup %2489  ;;  %v902_v16 = vsel %vm826_vm1, %v819_v11, 0.0  ;;  %v809_v17 = vmul.f32 %v2488_v41, %v2846_v0 }
 0x130   : > { %v2492_v18 = vpop.eup %2491  ;;  %v869_v19 = vsel %vm826_vm1, %v808_v14, 0.0  ;;  %v816_v20 = vmul.f32 %v2490_v15, %v2846_v0 }
 0x131   : > { %861 = vadd.xlane.f32.xlu1 %v860_v59  ;;  %v2494_v23 = vpop.eup %2493  ;;  %v872_v27 = vsel %vm826_vm1, %v809_v17, 0.0  ;;  %v817_v21 = vmul.f32 %v2492_v18, %v2846_v0 }
 0x132   : > { %864 = vadd.xlane.f32.xlu0 %v863_v1  ;;  %v893_v28 = vsel %vm826_vm1, %v816_v20, 0.0  ;;  %v820_v29 = vmul.f32 %v2494_v23, %v2846_v0 }
 0x133   : > { %v896_v31 = vsel %vm826_vm1, %v817_v21, 0.0 }
 0x134   : > { %v905_v33 = vsel %vm826_vm1, %v820_v29, 0.0 }
 0x135   : > { %867 = vadd.xlane.f32.xlu1 %v866_v51 }
 0x136   : > { %882 = vadd.xlane.f32.xlu0 %v881_v49 }
 0x139   : > { %885 = vadd.xlane.f32.xlu1 %v884_v6 }
 0x13a   : > { %888 = vadd.xlane.f32.xlu0 %v887_v8 }
 0x13d   : > { %891 = vadd.xlane.f32.xlu1 %v890_v12 }
 0x13e   : > { %900 = vadd.xlane.f32.xlu0 %v899_v13 }
 0x141   : > { %903 = vadd.xlane.f32.xlu1 %v902_v16 }
 0x142   : > { %870 = vadd.xlane.f32.xlu0 %v869_v19 }
 0x145   : > { %873 = vadd.xlane.f32.xlu1 %v872_v27 }
 0x146   : > { %894 = vadd.xlane.f32.xlu0 %v893_v28 }
 0x149   : > { %897 = vadd.xlane.f32.xlu1 %v896_v31 }
 0x14a   : > { %906 = vadd.xlane.f32.xlu0 %v905_v33 }
 0x14d   : > { %909 = vadd.xlane.f32.xlu1 %v2940_v52 }
 0x14e   : > { %912 = vadd.xlane.f32.xlu0 %v2881_v37 }
 0x151   : > { %915 = vadd.xlane.f32.xlu1 %v914_v57 }
 0x152   : > { %918 = vadd.xlane.f32.xlu0 %v2888_v44 }
 0x155   : > { %921 = vadd.xlane.f32.xlu1 %v920_v58 }
 0x197   : > { %v2979_v34 = vpop.xlane.xlu0 %828 }
 0x198   : > { %v960_v48 = vrot.slane %v2979_v34, %v3020_v56 }
 0x1a2   : > { %v2981_v25 = vpop.xlane.xlu1 %834 }
 0x1a3   : > { %v2983_v0 = vpop.xlane.xlu0 %831  ;;  %v971_v60 = vrot.slane %v2981_v25, %v3020_v56 }
 0x1a4   : > { %v965_v61 = vrot.slane %v2983_v0, %v3015_v55 }
 0x1a6   : > { %v2985_v35 = vpop.xlane.xlu1 %837  ;;  %v967_v49 = vsel %vm966_vm2, %v965_v61, %v960_v48 }
 0x1a7   : > { %v2987_v36 = vpop.xlane.xlu0 %840  ;;  %v975_v58 = vrot.slane %v2985_v35, %v3015_v55 }
 0x1a8   : > { %v980_v63 = vrot.slane %v2987_v36, %v3020_v56 }
 0x1a9   : > { %v976_v2 = vsel %vm966_vm2, %v975_v58, %v971_v60 }
 0x1aa   : > { %v2989_v38 = vpop.xlane.xlu1 %843  ;;  %v1104_v5 = vsel %vm1103_vm3, %v976_v2, %v967_v49 }
 0x1ab   : > { %v2991_v40 = vpop.xlane.xlu0 %852  ;;  %v984_v22 = vrot.slane %v2989_v38, %v3015_v55 }
 0x1ac   : > { %v998_v11 = vrot.slane %v2991_v40, %v3020_v56 }
 0x1ad   : > { %v985_v4 = vsel %vm966_vm2, %v984_v22, %v980_v63 }
 0x1ae   : > { %v2993_v42 = vpop.xlane.xlu1 %855  ;;  %v1106_v9 = vsel %vm1105_vm4, %v985_v4, %v1104_v5 }
 0x1af   : > { %v2995_v37 = vpop.xlane.xlu0 %876  ;;  %v1002_v6 = vrot.slane %v2993_v42, %v3015_v55 }
 0x1b0   : > { %v1034_v48 = vrot.slane %v2995_v37, %v3020_v56 }
 0x1b1   : > { %v1003_v15 = vsel %vm966_vm2, %v1002_v6, %v998_v11 }
 0x1b2   : > { %v2997_v44 = vpop.xlane.xlu1 %879 }
 0x1b3   : > { %v2999_v43 = vpop.xlane.xlu0 %846  ;;  %v1038_v22 = vrot.slane %v2997_v44, %v3015_v55 }
 0x1b4   : > { %v989_v51 = vrot.slane %v2999_v43, %v3020_v56 }
 0x1b6   : > { %v3001_v45 = vpop.xlane.xlu1 %849 }
 0x1b7   : > { %v3003_v46 = vpop.xlane.xlu0 %858  ;;  %v993_v62 = vrot.slane %v3001_v45, %v3015_v55 }
 0x1b8   : > { %v1007_v10 = vrot.slane %v3003_v46, %v3020_v56 }
 0x1b9   : > { %v994_v32 = vsel %vm966_vm2, %v993_v62, %v989_v51 }
 0x1ba   : > { %v3005_v47 = vpop.xlane.xlu1 %861  ;;  %v1108_v41 = vsel %vm1107_vm5, %v994_v32, %v1106_v9  ;;  %v1039_v32 = vsel %vm966_vm2, %v1038_v22, %v1034_v48  ;;  %v3150_v48 = vsub.s32 2, %v2793_v24 }
 0x1bb   : > { %v3008_v52 = vpop.xlane.xlu0 %864  ;;  %v1011_v26 = vrot.slane %v3005_v47, %v3015_v55  ;;  %v1110_v23 = vsel %vm1109_vm6, %v1003_v15, %v1108_v41 }
 0x1bc   : > { %v1016_v13 = vrot.slane %v3008_v52, %v3020_v56 }
 0x1bd   : > { %v1012_v14 = vsel %vm966_vm2, %v1011_v26, %v1007_v10 }
 0x1be   : > { %v3010_v53 = vpop.xlane.xlu1 %867  ;;  %v1112_v27 = vsel %vm1111_vm7, %v1012_v14, %v1110_v23 }
 0x1bf   : > { %v3012_v54 = vpop.xlane.xlu0 %882  ;;  %v1020_v7 = vrot.slane %v3010_v53, %v3015_v55 }
 0x1c0   : > { %v1043_v60 = vrot.slane %v3012_v54, %v3020_v56 }
 0x1c1   : > { %v1021_v17 = vsel %vm966_vm2, %v1020_v7, %v1016_v13 }
 0x1c2   : > { %v3017_v57 = vpop.xlane.xlu1 %885  ;;  %v1114_v28 = vsel %vm1113_vm8, %v1021_v17, %v1112_v27 }
 0x1c3   : > { %v3024_v59 = vpop.xlane.xlu0 %888  ;;  %v1047_v33 = vrot.slane %v3017_v57, %v3015_v55 }
 0x1c4   : > { %v1052_v62 = vrot.slane %v3024_v59, %v3020_v56 }
 0x1c5   : > { %v1048_v2 = vsel %vm966_vm2, %v1047_v33, %v1043_v60 }
 0x1c6   : > { %v3036_v1 = vpop.xlane.xlu1 %891  ;;  %v1117_v6 = vsel %vm1103_vm3, %v1048_v2, %v1039_v32  ;;  %v3155_v32 = vsub.s32 3, %v2793_v24 }
 0x1c7   : > { %v3043_v3 = vpop.xlane.xlu0 %900  ;;  %v1056_v58 = vrot.slane %v3036_v1, %v3015_v55 }
 0x1c8   : > { %v1070_v13 = vrot.slane %v3043_v3, %v3020_v56 }
 0x1c9   : > { %v1057_v49 = vsel %vm966_vm2, %v1056_v58, %v1052_v62  ;;  %v3147_v62 = vsub.s32 1, %v2793_v24 }
 0x1ca   : > { %v3055_v8 = vpop.xlane.xlu1 %903  ;;  %v1118_v10 = vsel %vm1105_vm4, %v1057_v49, %v1117_v6 }
 0x1cb   : > { %v3060_v12 = vpop.xlane.xlu0 %870  ;;  %v1074_v7 = vrot.slane %v3055_v8, %v3015_v55 }
 0x1cc   : > { %v1025_v18 = vrot.slane %v3060_v12, %v3020_v56 }
 0x1ce   : > { %v3069_v16 = vpop.xlane.xlu1 %873 }
 0x1cf   : > { %v1029_v19 = vrot.slane %v3069_v16, %v3015_v55  ;;  %v3076_v20 = vpop.xlane.xlu0 %894 }
 0x1d0   : > { %v1061_v51 = vrot.slane %v3076_v20, %v3020_v56 }
 0x1d1   : > { %v1030_v21 = vsel %vm966_vm2, %v1029_v19, %v1025_v18  ;;  %v1075_v19 = vsel %vm966_vm2, %v1074_v7, %v1070_v13 }
 0x1d2   : > { %v3082_v29 = vpop.xlane.xlu1 %897  ;;  %v1116_v31 = vsel %vm1115_vm9, %v1030_v21, %v1114_v28 }
 0x1d3   : > { %v3087_v50 = vpop.xlane.xlu0 %906  ;;  %v1127_v39 = vsel %vm1126_vm10, %v1116_v31, -inf  ;;  %v1065_v61 = vrot.slane %v3082_v29, %v3015_v55 }
 0x1d4   : > { %1128 = vmax.xlane.f32.xlu0 %v1127_v39  ;;  %v1079_v11 = vrot.slane %v3087_v50, %v3020_v56 }
 0x1d5   : > { %v1066_v26 = vsel %vm966_vm2, %v1065_v61, %v1061_v51  ;;  %v2628_v61 = vmov 0  }
 0x1d6   : > { %v3100_v63 = vpop.xlane.xlu1 %909  ;;  %v1119_v14 = vsel %vm1107_vm5, %v1066_v26, %v1118_v10  ;;  %2409 = vset.pattern.permute.xlu1 %v2628_v61  ;;  %2408 = vset.pattern.permute.xlu0 %v2628_v61  ;;  %v3162_v10 = vsub.s32 4, %v2793_v24 }
 0x1d7   : > { %v3107_v4 = vpop.xlane.xlu0 %912  ;;  %v1083_v5 = vrot.slane %v3100_v63, %v3015_v55  ;;  %v1120_v31 = vsel %vm1109_vm6, %v1075_v19, %v1119_v14 }
 0x1d8   : > { %v1088_v15 = vrot.slane %v3107_v4, %v3020_v56 }
 0x1d9   : > { %v1084_v18 = vsel %vm966_vm2, %v1083_v5, %v1079_v11 }
 0x1da   : > { %v3117_v9 = vpop.xlane.xlu1 %915  ;;  %v1121_v33 = vsel %vm1111_vm7, %v1084_v18, %v1120_v31 }
 0x1db   : > { %v1092_v41 = vrot.slane %v3117_v9, %v3015_v55  ;;  %v3129_v17 = vpop.xlane.xlu0 %918 }
 0x1dc   : > { %v1097_v21 = vrot.slane %v3129_v17, %v3020_v56 }
 0x1dd   : > { %v1093_v27 = vsel %vm966_vm2, %v1092_v41, %v1088_v15  ;;  %v3167_v15 = vsub.s32 5, %v2793_v24 }
 0x1de   : > { %v3133_v23 = vpop.xlane.xlu1 %921  ;;  %v1122_v58 = vsel %vm1113_vm8, %v1093_v27, %v1121_v33  ;;  %v3173_v27 = vsub.s32 6, %v2793_v24  ;;  %v3179_v33 = vsub.s32 7, %v2793_v24 }
 0x1df   : > { %v1101_v28 = vrot.slane %v3133_v23, %v3015_v55 }
 0x1e1   : > { %v1102_v39 = vsel %vm966_vm2, %v1101_v28, %v1097_v21 }
 0x1e2   : > { %v1123_v22 = vsel %vm1115_vm9, %v1102_v39, %v1122_v58 }
 0x1e3   : > { %v1130_v60 = vsel %vm1126_vm10, %v1123_v22, -inf }
 0x1e4   : > { %1131 = vmax.xlane.f32.xlu1 %v1130_v60 }
 0x25d   : > { %v1129_v2 = vpop.xlane.xlu0 %1128 }
 0x25e   : > { %v1138_v51 = vrot.slane %v1129_v2, %v2801_v30  ;;  %v1142_v49 = vrot.slane %v1129_v2, %v3147_v62  ;;  %v1146_v26 = vrot.slane %v1129_v2, %v3150_v48  ;;  %v1150_v11 = vrot.slane %v1129_v2, %v3155_v32 }
 0x25f   : > { %v1158_v28 = vrot.slane %v1129_v2, %v3167_v15  ;;  %v1162_v58 = vrot.slane %v1129_v2, %v3173_v27 }
 0x260   : > { %v1215_v5 = vsub.f32 %v2979_v34, %v1138_v51  ;;  %v1216_v6 = vsub.f32 %v2983_v0, %v1138_v51  ;;  %v1217_v7 = vsub.f32 %v2981_v25, %v1142_v49  ;;  %v1220_v41 = vsub.f32 %v2989_v38, %v1146_v26 }
 0x261   : > { %v1218_v18 = vsub.f32 %v2985_v35, %v1142_v49  ;;  %v1154_v0 = vrot.slane %v1129_v2, %v3162_v10  ;;  %v1222_v25 = vsub.f32 %v3001_v45, %v1150_v11  ;;  %v1219_v38 = vsub.f32 %v2987_v36, %v1146_v26 }
 0x262   : > { %v1247_v13 = vmul.f32 1.442695, %v1215_v5  ;;  %v1249_v14 = vmul.f32 1.442695, %v1216_v6  ;;  %v1251_v34 = vmul.f32 1.442695, %v1217_v7  ;;  %v1221_v45 = vsub.f32 %v2999_v43, %v1150_v11 }
 0x263   : > { %v1257_v19 = vmul.f32 1.442695, %v1220_v41  ;;  %v1253_v21 = vmul.f32 1.442695, %v1218_v18  ;;  %v1224_v31 = vsub.f32 %v2993_v42, %v1154_v0  ;;  %v1261_v35 = vmul.f32 1.442695, %v1222_v25 }
 0x264   : > { %2495 = vpow2.f32 %v1247_v13  ;;  %v1255_v39 = vmul.f32 1.442695, %v1219_v38  ;;  %v1226_v22 = vsub.f32 %v3005_v47, %v1158_v28  ;;  %v1223_v60 = vsub.f32 %v2991_v40, %v1154_v0 }
 0x265   : > { %2497 = vpow2.f32 %v1249_v14  ;;  %v1265_v36 = vmul.f32 1.442695, %v1224_v31  ;;  %v1259_v61 = vmul.f32 1.442695, %v1221_v45  ;;  %v1166_v51 = vrot.slane %v1129_v2, %v3179_v33 }
 0x266   : > { %2499 = vpow2.f32 %v1251_v34  ;;  %v1228_v24 = vsub.f32 %v3010_v53, %v1162_v58  ;;  %v1269_v43 = vmul.f32 1.442695, %v1226_v22  ;;  %v1225_v40 = vsub.f32 %v3003_v46, %v1158_v28 }
 0x267   : > { %2501 = vpow2.f32 %v1257_v19  ;;  %v1263_v47 = vmul.f32 1.442695, %v1223_v60  ;;  %v1230_v2 = vsub.f32 %v3069_v16, %v1166_v51  ;;  %v1227_v46 = vsub.f32 %v3008_v52, %v1162_v58 }
 0x268   : > { %2503 = vpow2.f32 %v1253_v21  ;;  %v1273_v53 = vmul.f32 1.442695, %v1228_v24  ;;  %v1267_v11 = vmul.f32 1.442695, %v1225_v40  ;;  %v1229_v52 = vsub.f32 %v3060_v12, %v1166_v51 }
 0x269   : > { %2505 = vpow2.f32 %v1261_v35  ;;  %v1277_v16 = vmul.f32 1.442695, %v1230_v2  ;;  %v1271_v34 = vmul.f32 1.442695, %v1227_v46 }
 0x26a   : > { %2507 = vpow2.f32 %v1255_v39  ;;  %v1275_v12 = vmul.f32 1.442695, %v1229_v52 }
 0x26b   : > { %2509 = vpow2.f32 %v1265_v36 }
 0x26c   : > { %2511 = vpow2.f32 %v1259_v61 }
 0x26d   : > { %v3191_v26 = vpop.xlane.xlu1 %1131  ;;  %2513 = vpow2.f32 %v1269_v43 }
 0x26e   : > { %v3201_v6 = vrot.slane %v3191_v26, %v3150_v48  ;;  %2515 = vpow2.f32 %v1263_v47  ;;  %v3212_v13 = vrot.slane %v3191_v26, %v3155_v32  ;;  %v1170_v0 = vrot.slane %v3191_v26, %v2801_v30 }
 0x26f   : > { %2517 = vpow2.f32 %v1273_v53  ;;  %v3227_v19 = vrot.slane %v3191_v26, %v3162_v10  ;;  %v3240_v35 = vrot.slane %v3191_v26, %v3167_v15  ;;  %v1198_v40 = vrot.slane %v3191_v26, %v3179_v33 }
 0x270   : > { %v1236_v14 = vsub.f32 %v3036_v1, %v3201_v6  ;;  %2519 = vpow2.f32 %v1267_v11  ;;  %v1238_v1 = vsub.f32 %v3082_v29, %v3212_v13  ;;  %v1231_v28 = vsub.f32 %v2995_v37, %v1170_v0 }
 0x271   : > { %v3185_v42 = vpop.eup %2495  ;;  %2521 = vpow2.f32 %v1277_v16  ;;  %v1240_v29 = vsub.f32 %v3055_v8, %v3227_v19  ;;  %v1174_v37 = vrot.slane %v3191_v26, %v3147_v62  ;;  %v1232_v58 = vsub.f32 %v2997_v44, %v1170_v0 }
 0x272   : > { %v3189_v49 = vpop.eup %2497  ;;  %1344 = vperm.xlu0 %2408, %v3185_v42   ;;  %v1289_v38 = vmul.f32 1.442695, %v1236_v14  ;;  %2523 = vpow2.f32 %v1271_v34  ;;  %v1293_v45 = vmul.f32 1.442695, %v1238_v1  ;;  %v1279_v22 = vmul.f32 1.442695, %v1231_v28 }
 0x273   : > { %1347 = vperm.xlu1 %2409, %v3189_v49   ;;  %v3196_v5 = vpop.eup %2499  ;;  %v3255_v8 = vrot.slane %v3191_v26, %v3173_v27  ;;  %v1242_v60 = vsub.f32 %v3100_v63, %v3240_v35  ;;  %v1297_v61 = vmul.f32 1.442695, %v1240_v29  ;;  %v1233_v44 = vsub.f32 %v3012_v54, %v1174_v37 }
 0x274   : > { %v3203_v7 = vpop.eup %2501  ;;  %2525 = vpow2.f32 %v1289_v38  ;;  %v1281_v24 = vmul.f32 1.442695, %v1232_v58  ;;  %v1234_v54 = vsub.f32 %v3017_v57, %v1174_v37  ;;  %v1246_v11 = vsub.f32 %v3133_v23, %v1198_v40 }
 0x275   : > { %v3208_v41 = vpop.eup %2503  ;;  %2527 = vpow2.f32 %v1275_v12  ;;  %v1244_v63 = vsub.f32 %v3117_v9, %v3255_v8  ;;  %v1301_v47 = vmul.f32 1.442695, %v1242_v60  ;;  %v1283_v53 = vmul.f32 1.442695, %v1233_v44 }
 0x276   : > { %1359 = vperm.xlu0 %2408, %v3203_v7   ;;  %v3216_v18 = vpop.eup %2505  ;;  %2529 = vpow2.f32 %v1293_v45  ;;  %v1285_v9 = vmul.f32 1.442695, %v1234_v54  ;;  %v1235_v57 = vsub.f32 %v3024_v59, %v3201_v6  ;;  %v1309_v52 = vmul.f32 1.442695, %v1246_v11 }
 0x277   : > { %1350 = vperm.xlu1 %2409, %v3196_v5   ;;  %v3223_v25 = vpop.eup %2507  ;;  %2531 = vpow2.f32 %v1279_v22  ;;  %v1305_v26 = vmul.f32 1.442695, %v1244_v63  ;;  %v1237_v0 = vsub.f32 %v3076_v20, %v3212_v13  ;;  %v1239_v6 = vsub.f32 %v3043_v3, %v3227_v19 }
 0x278   : > { %v3231_v21 = vpop.eup %2509  ;;  %2533 = vpow2.f32 %v1297_v61  ;;  %v1287_v1 = vmul.f32 1.442695, %v1235_v57  ;;  %v1241_v13 = vsub.f32 %v3087_v50, %v3240_v35  ;;  %v1243_v19 = vsub.f32 %v3107_v4, %v3255_v8 }
 0x279   : > { %v3236_v31 = vpop.eup %2511  ;;  %2535 = vpow2.f32 %v1281_v24  ;;  %v1291_v12 = vmul.f32 1.442695, %v1237_v0  ;;  %v1295_v29 = vmul.f32 1.442695, %v1239_v6  ;;  %v1245_v50 = vsub.f32 %v3129_v17, %v1198_v40 }
 0x27a   : > { %1365 = vperm.xlu0 %2408, %v3216_v18   ;;  %v3244_v39 = vpop.eup %2513  ;;  %2537 = vpow2.f32 %v1301_v47  ;;  %v1299_v37 = vmul.f32 1.442695, %v1241_v13  ;;  %v1303_v35 = vmul.f32 1.442695, %v1243_v19 }
 0x27b   : > { %1353 = vperm.xlu1 %2409, %v3208_v41   ;;  %v3251_v36 = vpop.eup %2515  ;;  %2539 = vpow2.f32 %v1283_v53  ;;  %v1307_v60 = vmul.f32 1.442695, %v1245_v50 }
 0x27c   : > { %v3259_v51 = vpop.eup %2517  ;;  %2541 = vpow2.f32 %v1305_v26 }
 0x27d   : > { %v3264_v43 = vpop.eup %2519  ;;  %2543 = vpow2.f32 %v1285_v9 }
 0x27e   : > { %1371 = vperm.xlu0 %2408, %v3231_v21   ;;  %v3270_v2 = vpop.eup %2521  ;;  %2545 = vpow2.f32 %v1309_v52 }
 0x27f   : > { %1356 = vperm.xlu1 %2409, %v3223_v25   ;;  %v3275_v46 = vpop.eup %2523  ;;  %2547 = vpow2.f32 %v1287_v1 }
 0x280   : > { %2549 = vpow2.f32 %v1291_v12 }
 0x281   : > { %v3278_v16 = vpop.eup %2525  ;;  %2551 = vpow2.f32 %v1295_v29 }
 0x282   : > { %1377 = vperm.xlu0 %2408, %v3244_v39   ;;  %v3282_v14 = vpop.eup %2527  ;;  %2553 = vpow2.f32 %v1299_v37 }
 0x283   : > { %1362 = vperm.xlu1 %2409, %v3236_v31   ;;  %v3286_v34 = vpop.eup %2529  ;;  %2555 = vpow2.f32 %v1303_v35 }
 0x284   : > { %v3290_v23 = vpop.eup %2531  ;;  %2557 = vpow2.f32 %v1307_v60 }
 0x285   : > { %v3294_v38 = vpop.eup %2533 }
 0x286   : > { %1383 = vperm.xlu0 %2408, %v3259_v51   ;;  %v3298_v59 = vpop.eup %2535 }
 0x287   : > { %1368 = vperm.xlu1 %2409, %v3251_v36   ;;  %v3302_v28 = vpop.eup %2537 }
 0x288   : > { %v3306_v20 = vpop.eup %2539 }
 0x289   : > { %v3310_v45 = vpop.eup %2541 }
 0x28a   : > { %1389 = vperm.xlu0 %2408, %v3270_v2   ;;  %v3314_v3 = vpop.eup %2543 }
 0x28b   : > { %1374 = vperm.xlu1 %2409, %v3264_v43   ;;  %v3318_v58 = vpop.eup %2545 }
 0x28c   : > { %3579 = vst [vmem:[#allocation5_spill] sm:$0xff] %v3318_v58  ;;  %v3323_v22 = vpop.eup %2547 }
 0x28d   : > { %v3326_v61 = vpop.eup %2549 }
 0x28e   : > { %1407 = vperm.xlu0 %2408, %v3278_v16   ;;  %v3329_v4 = vpop.eup %2551 }
 0x28f   : > { %1380 = vperm.xlu1 %2409, %v3275_v46   ;;  %v3332_v8 = vpop.eup %2553 }
 0x290   : > { %v3335_v17 = vpop.eup %2555 }
 0x291   : > { %v3338_v44 = vpop.eup %2557 }
 0x292   : > { %1413 = vperm.xlu0 %2408, %v3286_v34   ;;  %3580 = vst [vmem:[#allocation6_spill] sm:$0xff] %v3338_v44 }
 0x293   : > { %1386 = vperm.xlu1 %2409, %v3282_v14  }
 0x296   : > { %1419 = vperm.xlu0 %2408, %v3294_v38  }
 0x297   : > { %1392 = vperm.xlu1 %2409, %v3290_v23  }
 0x29a   : > { %1425 = vperm.xlu0 %2408, %v3302_v28  }
 0x29b   : > { %1395 = vperm.xlu1 %2409, %v3298_v59  }
 0x29e   : > { %1431 = vperm.xlu0 %2408, %v3310_v45  }
 0x29f   : > { %1398 = vperm.xlu1 %2409, %v3306_v20  }
 0x2a2   : > { %1437 = vperm.xlu0 %2408, %v3318_v58  }
 0x2a3   : > { %1401 = vperm.xlu1 %2409, %v3314_v3  }
 0x2a7   : > { %1404 = vperm.xlu1 %2409, %v3323_v22  }
 0x2ab   : > { %1410 = vperm.xlu1 %2409, %v3326_v61  }
 0x2af   : > { %1416 = vperm.xlu1 %2409, %v3329_v4  }
 0x2b3   : > { %1422 = vperm.xlu1 %2409, %v3332_v8  }
 0x2b7   : > { %1428 = vperm.xlu1 %2409, %v3335_v17  }
 0x2bb   : > { %1434 = vperm.xlu1 %2409, %v3338_v44  }
 0x2ed   : > { %v1345_v24 = vpop.permute.xlu0 %1344 }
 0x2ee   : > { %v1348_v40 = vpop.permute.xlu1 %1347  ;;  %v1442_v29 = vrot.slane %v1345_v24, %v3020_v56 }
 0x2ef   : > { %v1446_v13 = vrot.slane %v1348_v40, %v3015_v55 }
 0x2f1   : > { %v1360_v47 = vpop.permute.xlu0 %1359  ;;  %v1447_v24 = vsel %vm966_vm2, %v1446_v13, %v1442_v29 }
 0x2f2   : > { %v1351_v63 = vpop.permute.xlu1 %1350  ;;  %v1464_v50 = vrot.slane %v1360_v47, %v3015_v55 }
 0x2f3   : > { %v1451_v19 = vrot.slane %v1351_v63, %v3020_v56 }
 0x2f5   : > { %v1366_v53 = vpop.permute.xlu0 %1365 }
 0x2f6   : > { %v1354_v54 = vpop.permute.xlu1 %1353 }
 0x2f7   : > { %v1455_v0 = vrot.slane %v1354_v54, %v3015_v55  ;;  %v1473_v54 = vrot.slane %v1366_v53, %v3015_v55 }
 0x2f9   : > { %v1372_v26 = vpop.permute.xlu0 %1371  ;;  %v1456_v60 = vsel %vm966_vm2, %v1455_v0, %v1451_v19 }
 0x2fa   : > { %v1357_v11 = vpop.permute.xlu1 %1356  ;;  %v1482_v40 = vrot.slane %v1372_v26, %v3015_v55 }
 0x2fb   : > { %v1460_v1 = vrot.slane %v1357_v11, %v3020_v56 }
 0x2fd   : > { %v1378_v57 = vpop.permute.xlu0 %1377  ;;  %v1465_v58 = vsel %vm966_vm2, %v1464_v50, %v1460_v1 }
 0x2fe   : > { %v1363_v9 = vpop.permute.xlu1 %1362 }
 0x2ff   : > { %v1469_v37 = vrot.slane %v1363_v9, %v3020_v56  ;;  %v1491_v9 = vrot.slane %v1378_v57, %v3015_v55 }
 0x301   : > { %v1384_v6 = vpop.permute.xlu0 %1383  ;;  %v1474_v63 = vsel %vm966_vm2, %v1473_v54, %v1469_v37 }
 0x302   : > { %v1369_v52 = vpop.permute.xlu1 %1368  ;;  %v1500_v53 = vrot.slane %v1384_v6, %v3015_v55 }
 0x303   : > { %v1478_v35 = vrot.slane %v1369_v52, %v3020_v56  ;;  %v1583_v52 = vsel %vm1103_vm3, %v1456_v60, %v1447_v24 }
 0x304   : > { %v1584_v1 = vsel %vm1105_vm4, %v1465_v58, %v1583_v52 }
 0x305   : > { %v1483_v0 = vsel %vm966_vm2, %v1482_v40, %v1478_v35  ;;  %v1585_v19 = vsel %vm1107_vm5, %v1474_v63, %v1584_v1 }
 0x306   : > { %v1375_v12 = vpop.permute.xlu1 %1374  ;;  %v1586_v57 = vsel %vm1109_vm6, %v1483_v0, %v1585_v19 }
 0x307   : > { %v1487_v11 = vrot.slane %v1375_v12, %v3020_v56  ;;  %v1390_v12 = vpop.permute.xlu0 %1389 }
 0x309   : > { %v1492_v26 = vsel %vm966_vm2, %v1491_v9, %v1487_v11 }
 0x30a   : > { %v1381_v44 = vpop.permute.xlu1 %1380  ;;  %v1587_v50 = vsel %vm1111_vm7, %v1492_v26, %v1586_v57 }
 0x30b   : > { %v1496_v47 = vrot.slane %v1381_v44, %v3020_v56  ;;  %v1509_v44 = vrot.slane %v1390_v12, %v3015_v55  ;;  %v1408_v11 = vpop.permute.xlu0 %1407 }
 0x30d   : > { %v1501_v13 = vsel %vm966_vm2, %v1500_v53, %v1496_v47 }
 0x30e   : > { %v1387_v29 = vpop.permute.xlu1 %1386  ;;  %v1588_v35 = vsel %vm1113_vm8, %v1501_v13, %v1587_v50 }
 0x30f   : > { %v1505_v37 = vrot.slane %v1387_v29, %v3020_v56  ;;  %v1414_v63 = vpop.permute.xlu0 %1413 }
 0x311   : > { %v1510_v6 = vsel %vm966_vm2, %v1509_v44, %v1505_v37  ;;  %v1536_v37 = vrot.slane %v1408_v11, %v3015_v55 }
 0x312   : > { %v1393_v58 = vpop.permute.xlu1 %1392  ;;  %v1589_v60 = vsel %vm1115_vm9, %v1510_v6, %v1588_v35  ;;  %v1545_v6 = vrot.slane %v1414_v63, %v3015_v55 }
 0x313   : > { %v1599_v54 = vsel %vm1126_vm10, %v1589_v60, 0.0  ;;  %v1420_v47 = vpop.permute.xlu0 %1419  ;;  %v1514_v35 = vrot.slane %v1393_v58, %v3020_v56 }
 0x314   : > { %1600 = vadd.xlane.f32.xlu1 %v1599_v54 }
 0x316   : > { %v1396_v40 = vpop.permute.xlu1 %1395 }
 0x317   : > { %v1426_v53 = vpop.permute.xlu0 %1425  ;;  %v1518_v29 = vrot.slane %v1396_v40, %v3015_v55 }
 0x31a   : > { %v1399_v24 = vpop.permute.xlu1 %1398 }
 0x31b   : > { %v1432_v26 = vpop.permute.xlu0 %1431  ;;  %v1523_v57 = vrot.slane %v1399_v24, %v3020_v56  ;;  %v1519_v24 = vsel %vm966_vm2, %v1518_v29, %v1514_v35 }
 0x31c   : > { %v1572_v63 = vrot.slane %v1432_v26, %v3015_v55 }
 0x31e   : > { %v1402_v9 = vpop.permute.xlu1 %1401 }
 0x31f   : > { %v1527_v1 = vrot.slane %v1402_v9, %v3015_v55  ;;  %v1554_v9 = vrot.slane %v1420_v47, %v3015_v55 }
 0x321   : > { %v1528_v60 = vsel %vm966_vm2, %v1527_v1, %v1523_v57  ;;  %v1438_v1 = vpop.permute.xlu0 %1437 }
 0x322   : > { %v1405_v52 = vpop.permute.xlu1 %1404  ;;  %v1590_v58 = vsel %vm1103_vm3, %v1528_v60, %v1519_v24 }
 0x323   : > { %v1532_v19 = vrot.slane %v1405_v52, %v3020_v56 }
 0x325   : > { %v1537_v40 = vsel %vm966_vm2, %v1536_v37, %v1532_v19 }
 0x326   : > { %v1411_v0 = vpop.permute.xlu1 %1410  ;;  %v1591_v47 = vsel %vm1105_vm4, %v1537_v40, %v1590_v58 }
 0x327   : > { %v1541_v44 = vrot.slane %v1411_v0, %v3020_v56  ;;  %v1563_v0 = vrot.slane %v1426_v53, %v3015_v55 }
 0x329   : > { %v1546_v11 = vsel %vm966_vm2, %v1545_v6, %v1541_v44  ;;  %v1581_v44 = vrot.slane %v1438_v1, %v3015_v55 }
 0x32a   : > { %v1417_v12 = vpop.permute.xlu1 %1416  ;;  %v1592_v57 = vsel %vm1107_vm5, %v1546_v11, %v1591_v47 }
 0x32b   : > { %v1550_v50 = vrot.slane %v1417_v12, %v3020_v56 }
 0x32e   : > { %v1423_v13 = vpop.permute.xlu1 %1422 }
 0x32f   : > { %v1559_v54 = vrot.slane %v1423_v13, %v3020_v56  ;;  %v1555_v13 = vsel %vm966_vm2, %v1554_v9, %v1550_v50 }
 0x330   : > { %v1593_v37 = vsel %vm1109_vm6, %v1555_v13, %v1592_v57 }
 0x331   : > { %v1564_v19 = vsel %vm966_vm2, %v1563_v0, %v1559_v54 }
 0x332   : > { %v1429_v52 = vpop.permute.xlu1 %1428  ;;  %v1594_v6 = vsel %vm1111_vm7, %v1564_v19, %v1593_v37 }
 0x333   : > { %v1568_v12 = vrot.slane %v1429_v52, %v3020_v56 }
 0x335   : > { %v1573_v29 = vsel %vm966_vm2, %v1572_v63, %v1568_v12 }
 0x336   : > { %v1435_v53 = vpop.permute.xlu1 %1434  ;;  %v1595_v50 = vsel %vm1113_vm8, %v1573_v29, %v1594_v6 }
 0x337   : > { %v1577_v26 = vrot.slane %v1435_v53, %v3020_v56 }
 0x339   : > { %v1582_v35 = vsel %vm966_vm2, %v1581_v44, %v1577_v26 }
 0x33a   : > { %v1596_v60 = vsel %vm1115_vm9, %v1582_v35, %v1595_v50 }
 0x33b   : > { %v1602_v54 = vsel %vm1126_vm10, %v1596_v60, 0.0 }
 0x33c   : > { %1603 = vadd.xlane.f32.xlu0 %v1602_v54 }
 0x39d   : > { %v1601_v9 = vpop.xlane.xlu1 %1600 }
 0x39e   : > { %2559 = vrcp.f32 %v1601_v9 }
 0x3ab   : > { %v2560_v40 = vpop.eup %2559 }
 0x3ac   : > { %v1612_v52 = vrot.slane %v2560_v40, %v2801_v30  ;;  %v1616_v24 = vrot.slane %v2560_v40, %v3147_v62  ;;  %v1620_v0 = vrot.slane %v2560_v40, %v3150_v48  ;;  %v1624_v47 = vrot.slane %v2560_v40, %v3155_v32 }
 0x3ad   : > { %v1632_v26 = vrot.slane %v2560_v40, %v3167_v15 }
 0x3ae   : > { %v1689_v11 = vmul.f32 %v3185_v42, %v1612_v52  ;;  %v1690_v12 = vmul.f32 %v3189_v49, %v1612_v52  ;;  %v1691_v63 = vmul.f32 %v3196_v5, %v1616_v24  ;;  %v1692_v58 = vmul.f32 %v3208_v41, %v1616_v24 }
 0x3af   : > { %v1693_v13 = vmul.f32 %v3223_v25, %v1620_v0  ;;  %v1694_v53 = vmul.f32 %v3203_v7, %v1620_v0  ;;  %v1695_v42 = vmul.f32 %v3236_v31, %v1624_v47  ;;  %v1628_v49 = vrot.slane %v2560_v40, %v3162_v10 }
 0x3b0   : > { %v1721_v1 = vpack.c.bf16 %v1690_v12, %v1689_v11  ;;  %v1722_v29 = vpack.c.bf16 %v1692_v58, %v1691_v63  ;;  %v1696_v41 = vmul.f32 %v3216_v18, %v1624_v47  ;;  %v1699_v31 = vmul.f32 %v3264_v43, %v1632_v26 }
 0x3b1   : > { %v1723_v37 = vpack.c.bf16 %v1694_v53, %v1693_v13  ;;  %v1697_v25 = vmul.f32 %v3251_v36, %v1628_v49  ;;  %v1698_v50 = vmul.f32 %v3231_v21, %v1628_v49  ;;  %v1700_v60 = vmul.f32 %v3244_v39, %v1632_v26 }
 0x3b2   : > { %v1750_v19 = vunpack.c.h.b16 %v1721_v1  ;;  %v1749_v57 = vunpack.c.l.b16 %v1721_v1  ;;  %v1751_v44 = vunpack.c.l.b16 %v1722_v29  ;;  %v1752_v5 = vunpack.c.h.b16 %v1722_v29 }
 0x3b3   : > { %v1753_v6 = vunpack.c.l.b16 %v1723_v37  ;;  %v1754_v35 = vunpack.c.h.b16 %v1723_v37  ;;  %v1724_v7 = vpack.c.bf16 %v1696_v41, %v1695_v42  ;;  %v1725_v18 = vpack.c.bf16 %v1698_v50, %v1697_v25 }
 0x3b4   : > { %1769 = vperm.xlu1 %2409, %v1750_v19   ;;  %1766 = vperm.xlu0 %2408, %v1749_v57   ;;  %v1636_v52 = vrot.slane %v2560_v40, %v3173_v27  ;;  %v1726_v36 = vpack.c.bf16 %v1700_v60, %v1699_v31  ;;  %v1640_v24 = vrot.slane %v2560_v40, %v3179_v33  ;;  %v2429_v57 = vld [vmem:[%s2769_s20] sm:$0xff]  }
 0x3b5   : > { %v1755_v54 = vunpack.c.l.b16 %v1724_v7  ;;  %v1756_v9 = vunpack.c.h.b16 %v1724_v7  ;;  %v1757_v0 = vunpack.c.l.b16 %v1725_v18  ;;  %v1758_v11 = vunpack.c.h.b16 %v1725_v18  ;;  %2352 = vmatpush3.bf16.msra.mxu0 %v2429_v57 }
 0x3b6   : > { %v1701_v21 = vmul.f32 %v3275_v46, %v1636_v52  ;;  %v1702_v12 = vmul.f32 %v3259_v51, %v1636_v52  ;;  %v1703_v39 = vmul.f32 %v3282_v14, %v1640_v24  ;;  %v1704_v63 = vmul.f32 %v3270_v2, %v1640_v24 }
 0x3b7   : > { %v1759_v58 = vunpack.c.l.b16 %v1726_v36  ;;  %v1760_v1 = vunpack.c.h.b16 %v1726_v36 }
 0x3b8   : > { %1772 = vperm.xlu1 %2409, %v1751_v44   ;;  %1775 = vperm.xlu0 %2408, %v1752_v5   ;;  %v1727_v13 = vpack.c.bf16 %v1702_v12, %v1701_v21  ;;  %v1728_v19 = vpack.c.bf16 %v1704_v63, %v1703_v39  ;;  %v2430_v39 = vld [vmem:[%s2769_s20 + $0x8] sm:$0xff]   ;;  %s2287_s20 = sshll.u32 %s2688_s25, 8  ;;  %s2629_s25 = smov [#allocation2]  }
 0x3b9   : > { %2358 = vmatpush3.bf16.msra.mxu1 %v2430_v39  ;;  %s3526_s26 = scalar_lea.hbm %s3574_s6, %s2287_s20  ;;  %s2567_s10 = sshll.u32 %s2629_s25, 4  ;;  %s2568_s10 = int_to_ptr.vmem [resolvable:$false] %s2567_s10 }
 0x3ba   : > { %v1761_v40 = vunpack.c.l.b16 %v1727_v13  ;;  %v1762_v47 = vunpack.c.h.b16 %v1727_v13  ;;  %v1763_v51 = vunpack.c.l.b16 %v1728_v19  ;;  %v1764_v46 = vunpack.c.h.b16 %v1728_v19  ;;  %s2569_s11 = scalar_lea.vmem %s2568_s10, 512  ;;  %p2570_p1 = scmp.lt.s32.totalorder %s3521_s19, %s2568_s10 }
 0x3bb   : > { %p2571_p2 = scmp.lt.s32.totalorder %s2569_s11, %s2563_s9 }
 0x3bc   : > { %1778 = vperm.xlu1 %2409, %v1753_v6   ;;  %1781 = vperm.xlu0 %2408, %v1754_v35  }
 0x3bd   : > { %p2572_p3 = por %p2571_p2, %p2570_p1 }
 0x3bf   : > { %p2573_p4 = pnand %p2572_p3, %p2566_p0 }
 0x3c0   : > { %1784 = vperm.xlu1 %2409, %v1755_v54   ;;  %1787 = vperm.xlu0 %2408, %v1756_v9  }
 0x3c4   : > { %1790 = vperm.xlu1 %2409, %v1757_v0   ;;  %1793 = vperm.xlu0 %2408, %v1758_v11  }
 0x3c5   : > { %v1604_v43 = vpop.xlane.xlu0 %1603 }
 0x3c6   : > { %2561 = vrcp.f32 %v1604_v43 }
 0x3c8   : > { %1796 = vperm.xlu1 %2409, %v1759_v58   ;;  %1799 = vperm.xlu0 %2408, %v1760_v1  }
 0x3cc   : > { %1802 = vperm.xlu1 %2409, %v1761_v40   ;;  %1805 = vperm.xlu0 %2408, %v1762_v47  }
 0x3d0   : > { %1808 = vperm.xlu1 %2409, %v1763_v51   ;;  %1811 = vperm.xlu0 %2408, %v1764_v46  }
 0x3d3   : > { %v2562_v14 = vpop.eup %2561 }
 0x3d4   : > { %v1644_v2 = vrot.slane %v2562_v14, %v2801_v30  ;;  %v1648_v29 = vrot.slane %v2562_v14, %v3147_v62  ;;  %v1652_v53 = vrot.slane %v2562_v14, %v3150_v48  ;;  %v1656_v25 = vrot.slane %v2562_v14, %v3155_v32 }
 0x3d5   : > { %v1668_v9 = vrot.slane %v2562_v14, %v3173_v27  ;;  %v3582_v27 = vld [vmem:[#allocation5_spill] sm:$0xff] }
 0x3d6   : > { %v1705_v42 = vmul.f32 %v3290_v23, %v1644_v2  ;;  %v1706_v49 = vmul.f32 %v3298_v59, %v1644_v2  ;;  %v1707_v44 = vmul.f32 %v3306_v20, %v1648_v29  ;;  %v1708_v5 = vmul.f32 %v3314_v3, %v1648_v29 }
 0x3d7   : > { %v1709_v41 = vmul.f32 %v3323_v22, %v1652_v53  ;;  %v1710_v62 = vmul.f32 %v3278_v16, %v1652_v53  ;;  %v1711_v48 = vmul.f32 %v3326_v61, %v1656_v25  ;;  %v1660_v23 = vrot.slane %v2562_v14, %v3162_v10 }
 0x3d8   : > { %v1729_v37 = vpack.c.bf16 %v1706_v49, %v1705_v42  ;;  %v1730_v30 = vpack.c.bf16 %v1708_v5, %v1707_v44  ;;  %v1712_v3 = vmul.f32 %v3286_v34, %v1656_v25  ;;  %v1664_v22 = vrot.slane %v2562_v14, %v3167_v15 }
 0x3d9   : > { %v1731_v35 = vpack.c.bf16 %v1710_v62, %v1709_v41  ;;  %v1713_v32 = vmul.f32 %v3329_v4, %v1660_v23  ;;  %v1714_v31 = vmul.f32 %v3294_v38, %v1660_v23  ;;  %v1672_v15 = vrot.slane %v2562_v14, %v3179_v33 }
 0x3da   : > { %v1951_v26 = vunpack.c.h.b16 %v1729_v37  ;;  %v1950_v6 = vunpack.c.l.b16 %v1729_v37  ;;  %v1953_v59 = vunpack.c.h.b16 %v1730_v30  ;;  %v1952_v20 = vunpack.c.l.b16 %v1730_v30 }
 0x3db   : > { %v1955_v7 = vunpack.c.h.b16 %v1731_v35  ;;  %v1954_v50 = vunpack.c.l.b16 %v1731_v35  ;;  %v1732_v16 = vpack.c.bf16 %v1712_v3, %v1711_v48  ;;  %v1715_v10 = vmul.f32 %v3332_v8, %v1664_v22 }
 0x3dc   : > { %1970 = vperm.xlu0 %2408, %v1951_v26   ;;  %1967 = vperm.xlu1 %2409, %v1950_v6   ;;  %v1716_v61 = vmul.f32 %v3302_v28, %v1664_v22  ;;  %v1733_v34 = vpack.c.bf16 %v1714_v31, %v1713_v32  ;;  %v1717_v38 = vmul.f32 %v3335_v17, %v1668_v9  ;;  %v3581_v28 = vld [vmem:[#allocation6_spill] sm:$0xff] }
 0x3dd   : > { %v1957_v60 = vunpack.c.h.b16 %v1732_v16  ;;  %v1956_v54 = vunpack.c.l.b16 %v1732_v16  ;;  %v1718_v36 = vmul.f32 %v3310_v45, %v1668_v9  ;;  %v1719_v8 = vmul.f32 %v3581_v28, %v1672_v15 }
 0x3de   : > { %v1734_v4 = vpack.c.bf16 %v1716_v61, %v1715_v10  ;;  %v1959_v18 = vunpack.c.h.b16 %v1733_v34  ;;  %v1958_v52 = vunpack.c.l.b16 %v1733_v34  ;;  %v1720_v21 = vmul.f32 %v3582_v27, %v1672_v15 }
 0x3df   : > { %v1735_v11 = vpack.c.bf16 %v1718_v36, %v1717_v38 }
 0x3e0   : > { %1976 = vperm.xlu0 %2408, %v1953_v59   ;;  %1973 = vperm.xlu1 %2409, %v1952_v20   ;;  %v1961_v24 = vunpack.c.h.b16 %v1734_v4  ;;  %v1960_v0 = vunpack.c.l.b16 %v1734_v4  ;;  %v1736_v43 = vpack.c.bf16 %v1720_v21, %v1719_v8 }
 0x3e1   : > { %v1963_v12 = vunpack.c.h.b16 %v1735_v11  ;;  %v1962_v33 = vunpack.c.l.b16 %v1735_v11 }
 0x3e2   : > { %v1965_v17 = vunpack.c.h.b16 %v1736_v43  ;;  %v1964_v45 = vunpack.c.l.b16 %v1736_v43 }
 0x3e4   : > { %1982 = vperm.xlu0 %2408, %v1955_v7   ;;  %1979 = vperm.xlu1 %2409, %v1954_v50  }
 0x3e8   : > { %1988 = vperm.xlu0 %2408, %v1957_v60   ;;  %1985 = vperm.xlu1 %2409, %v1956_v54  }
 0x3ec   : > { %1994 = vperm.xlu0 %2408, %v1959_v18   ;;  %1991 = vperm.xlu1 %2409, %v1958_v52  }
 0x3f0   : > { %2000 = vperm.xlu0 %2408, %v1961_v24   ;;  %1997 = vperm.xlu1 %2409, %v1960_v0  }
 0x3f4   : > { %2006 = vperm.xlu0 %2408, %v1963_v12   ;;  %2003 = vperm.xlu1 %2409, %v1962_v33  }
 0x3f8   : > { %2012 = vperm.xlu0 %2408, %v1965_v17   ;;  %2009 = vperm.xlu1 %2409, %v1964_v45  }
 0x42f   : > { %v1770_v63 = vpop.permute.xlu1 %1769  ;;  %v1767_v58 = vpop.permute.xlu0 %1766 }
 0x430   : > { %v1820_v44 = vrot.slane %v1770_v63, %v3015_v55  ;;  %v1816_v5 = vrot.slane %v1767_v58, %v3020_v56 }
 0x432   : > { %v1821_v20 = vsel %vm966_vm2, %v1820_v44, %v1816_v5 }
 0x433   : > { %v1773_v1 = vpop.permute.xlu1 %1772  ;;  %v1776_v13 = vpop.permute.xlu0 %1775 }
 0x434   : > { %v1825_v14 = vrot.slane %v1773_v1, %v3020_v56  ;;  %v1829_v2 = vrot.slane %v1776_v13, %v3015_v55 }
 0x436   : > { %v1830_v6 = vsel %vm966_vm2, %v1829_v2, %v1825_v14 }
 0x437   : > { %v1779_v40 = vpop.permute.xlu1 %1778  ;;  %v1782_v47 = vpop.permute.xlu0 %1781  ;;  %v1885_v22 = vsel %vm1103_vm3, %v1830_v6, %v1821_v20 }
 0x438   : > { %v1834_v29 = vrot.slane %v1779_v40, %v3020_v56  ;;  %v1838_v53 = vrot.slane %v1782_v47, %v3015_v55 }
 0x43a   : > { %v1839_v48 = vsel %vm966_vm2, %v1838_v53, %v1834_v29 }
 0x43b   : > { %v1785_v19 = vpop.permute.xlu1 %1784  ;;  %v1788_v51 = vpop.permute.xlu0 %1787  ;;  %v1886_v50 = vsel %vm1105_vm4, %v1839_v48, %v1885_v22 }
 0x43c   : > { %v1843_v37 = vrot.slane %v1785_v19, %v3020_v56  ;;  %v1847_v41 = vrot.slane %v1788_v51, %v3015_v55 }
 0x43e   : > { %v1848_v35 = vsel %vm966_vm2, %v1847_v41, %v1843_v37 }
 0x43f   : > { %v1791_v46 = vpop.permute.xlu1 %1790  ;;  %v1794_v57 = vpop.permute.xlu0 %1793  ;;  %v1887_v31 = vsel %vm1107_vm5, %v1848_v35, %v1886_v50 }
 0x440   : > { %v1852_v25 = vrot.slane %v1791_v46, %v3020_v56  ;;  %v1856_v26 = vrot.slane %v1794_v57, %v3015_v55 }
 0x442   : > { %v1857_v7 = vsel %vm966_vm2, %v1856_v26, %v1852_v25 }
 0x443   : > { %v1797_v42 = vpop.permute.xlu1 %1796  ;;  %v1800_v49 = vpop.permute.xlu0 %1799  ;;  %v1888_v54 = vsel %vm1109_vm6, %v1857_v7, %v1887_v31 }
 0x444   : > { %v1861_v30 = vrot.slane %v1797_v42, %v3020_v56  ;;  %v1865_v62 = vrot.slane %v1800_v49, %v3015_v55 }
 0x446   : > { %v1866_v16 = vsel %vm966_vm2, %v1865_v62, %v1861_v30 }
 0x447   : > { %v1803_v23 = vpop.permute.xlu1 %1802  ;;  %v1806_v59 = vpop.permute.xlu0 %1805  ;;  %v1889_v4 = vsel %vm1111_vm7, %v1866_v16, %v1888_v54 }
 0x448   : > { %v1870_v3 = vrot.slane %v1803_v23, %v3020_v56  ;;  %v1874_v32 = vrot.slane %v1806_v59, %v3015_v55 }
 0x44a   : > { %v1875_v10 = vsel %vm966_vm2, %v1874_v32, %v1870_v3 }
 0x44b   : > { %v1809_v61 = vpop.permute.xlu1 %1808  ;;  %v1812_v60 = vpop.permute.xlu0 %1811  ;;  %v1890_v15 = vsel %vm1113_vm8, %v1875_v10, %v1889_v4 }
 0x44c   : > { %v1879_v34 = vrot.slane %v1809_v61, %v3020_v56  ;;  %v1883_v9 = vrot.slane %v1812_v60, %v3015_v55 }
 0x44e   : > { %v1884_v18 = vsel %vm966_vm2, %v1883_v9, %v1879_v34 }
 0x44f   : > { %v1891_v52 = vsel %vm1115_vm9, %v1884_v18, %v1890_v15 }
 0x450   : > { %v1892_v38 = vpack.c.b16 %v1891_v52, %v1891_v52 }
 0x452   : > { %2354 = vmatmul.mubr.msk.bf16.vlgmr.msra.gmra.mxu0 %vm1126_vm10, %v1892_v38 }
 0x457   : > { %v1968_v36 = vpop.permute.xlu1 %1967  ;;  %v1971_v28 = vpop.permute.xlu0 %1970 }
 0x458   : > { %v2017_v1 = vrot.slane %v1968_v36, %v3020_v56  ;;  %v2021_v13 = vrot.slane %v1971_v28, %v3015_v55 }
 0x45a   : > { %v2022_v42 = vsel %vm966_vm2, %v2021_v13, %v2017_v1 }
 0x45b   : > { %v1974_v8 = vpop.permute.xlu1 %1973  ;;  %v1977_v24 = vpop.permute.xlu0 %1976 }
 0x45c   : > { %v2026_v43 = vrot.slane %v1974_v8, %v3020_v56  ;;  %v2030_v39 = vrot.slane %v1977_v24, %v3015_v55 }
 0x45e   : > { %v2031_v46 = vsel %vm966_vm2, %v2030_v39, %v2026_v43 }
 0x45f   : > { %v1980_v0 = vpop.permute.xlu1 %1979  ;;  %v1983_v11 = vpop.permute.xlu0 %1982  ;;  %v2086_v37 = vsel %vm1103_vm3, %v2031_v46, %v2022_v42 }
 0x460   : > { %v2035_v17 = vrot.slane %v1980_v0, %v3020_v56  ;;  %v2039_v45 = vrot.slane %v1983_v11, %v3015_v55 }
 0x462   : > { %v2040_v2 = vsel %vm966_vm2, %v2039_v45, %v2035_v17 }
 0x463   : > { %v1986_v27 = vpop.permute.xlu1 %1985  ;;  %v1989_v21 = vpop.permute.xlu0 %1988  ;;  %v2087_v25 = vsel %vm1105_vm4, %v2040_v2, %v2086_v37 }
 0x464   : > { %v2044_v40 = vrot.slane %v1986_v27, %v3020_v56  ;;  %v2048_v47 = vrot.slane %v1989_v21, %v3015_v55 }
 0x466   : > { %v2049_v49 = vsel %vm966_vm2, %v2048_v47, %v2044_v40 }
 0x467   : > { %v1992_v12 = vpop.permute.xlu1 %1991  ;;  %v1995_v33 = vpop.permute.xlu0 %1994  ;;  %v2088_v6 = vsel %vm1107_vm5, %v2049_v49, %v2087_v25 }
 0x468   : > { %v2053_v19 = vrot.slane %v1992_v12, %v3020_v56  ;;  %v2057_v51 = vrot.slane %v1995_v33, %v3015_v55 }
 0x46a   : > { %v2058_v41 = vsel %vm966_vm2, %v2057_v51, %v2053_v19 }
 0x46b   : > { %v1998_v63 = vpop.permute.xlu1 %1997  ;;  %v2001_v58 = vpop.permute.xlu0 %2000  ;;  %v2089_v23 = vsel %vm1109_vm6, %v2058_v41, %v2088_v6 }
 0x46c   : > { %v2062_v57 = vrot.slane %v1998_v63, %v3020_v56  ;;  %v2066_v14 = vrot.slane %v2001_v58, %v3015_v55 }
 0x46e   : > { %v2067_v26 = vsel %vm966_vm2, %v2066_v14, %v2062_v57 }
 0x46f   : > { %v2004_v29 = vpop.permute.xlu1 %2003  ;;  %v2007_v53 = vpop.permute.xlu0 %2006  ;;  %v2090_v35 = vsel %vm1111_vm7, %v2067_v26, %v2089_v23 }
 0x470   : > { %v2071_v44 = vrot.slane %v2004_v29, %v3020_v56  ;;  %v2075_v5 = vrot.slane %v2007_v53, %v3015_v55 }
 0x472   : > { %v2076_v30 = vsel %vm966_vm2, %v2075_v5, %v2071_v44 }
 0x473   : > { %v2010_v62 = vpop.permute.xlu1 %2009  ;;  %v2013_v48 = vpop.permute.xlu0 %2012  ;;  %v2091_v3 = vsel %vm1113_vm8, %v2076_v30, %v2090_v35 }
 0x474   : > { %v2080_v59 = vrot.slane %v2010_v62, %v3020_v56  ;;  %v2084_v20 = vrot.slane %v2013_v48, %v3015_v55 }
 0x476   : > { %v2085_v32 = vsel %vm966_vm2, %v2084_v20, %v2080_v59 }
 0x477   : > { %v2092_v22 = vsel %vm1115_vm9, %v2085_v32, %v2091_v3 }
 0x478   : > { %v2093_v7 = vpack.c.b16 %v2092_v22, %v2092_v22 }
 0x47a   : > { %2360 = vmatmul.mubr.msk.bf16.vlgmr.msra.gmra.mxu1 %vm1126_vm10, %v2093_v7 }
 0x512   : > { %v1936_v50 = vpop.f32.mrf.mxu0 }
 0x513   : > { %2143 = vst [vmem:[%s279_s13] sm:$0xff] %v1936_v50 }
 0x514   : > { %v2355_v56 = vpop.f32.mrf.mxu0 }
 0x516   : > { %v1939_v55 = vpop.f32.mrf.mxu0 }
 0x518   : > { %v2356_v16 = vpop.f32.mrf.mxu0 }
 0x53a   : > { %v2137_v31 = vpop.f32.mrf.mxu1 }
 0x53b   : > { %2144 = vst [vmem:[%s279_s13 + $0x8] sm:$0xff] %v2137_v31 }
 0x53c   : > { %v2361_v10 = vpop.f32.mrf.mxu1 }
 0x53d   : > { %2576 = shalt.err (!%p2573_p4)
}
 0x53e   : > { %s2577_s14 = scalar_lea.hbm %s3526_s26, 256  ;;  %s2581_s16 = scalar_lea.hbm %s3574_s6, 512 }
 0x53f   : > { %p2578_p7 = scmp.ne.s32.totalorder %s3526_s26, %s2577_s14  ;;  %p2582_p10 = scmp.lt.s32.totalorder %s3526_s26, %s3574_s6 }
 0x540   : > { %p2583_p11 = scmp.lt.s32.totalorder %s2581_s16, %s2577_s14 }
 0x541   : > { %p2579_p8 = pnand %p2578_p7, %p2705_p5 }
 0x542   : > { %p2584_p12 = por %p2583_p11, %p2582_p10 }
 0x543   : > { %p2580_p9 = pneg %p2579_p8 }
 0x545   : > { %p2585_p13 = pnand %p2584_p12, %p2580_p9 }
 0x547   : > { %2588 = shalt.err (!%p2585_p13)
}
 0x548   : > { %s2630_s20 = smov 128   ;;  %s2631_s15 = smov 8   ;;  %v2140_v61 = vpop.f32.mrf.mxu1 }
 0x549   : > { %2363 = dma.vmem_to_hbm [thread:$0]  (%p2705_p5), %s3521_s19, 256, %s3526_s26, %s3528_s29, %s2630_s20, %s2630_s20, %s2631_s15  }
 0x54a   : > { %v2362_v60 = vpop.f32.mrf.mxu1 }
 0x54b PF: > { %p2369_p0 = scmp.ge.s32.totalorder %s2623_s24, 2  ;;  %s2174_s12 = sand.u32 1, %s2611_s21  }
 0x54c   : > { %s2175_s9 = scalar_lea.sflag [#allocation3], %s2174_s12 }
 0x54d   : > { %p2366_p1 = pnand %p2369_p0, %p2709_p6 }
 0x54f   : > { %p2367_p2 = pneg %p2366_p1 }
 0x551   : > { %2606 = dma.done.wait (%p2367_p2), %s2175_s9, 256  }
 0x552   : > { %2608 = vsyncadd (%p2367_p2), %s2175_s9, 4294967040  ;;  %p16_p5 = scmp.ge.s32.totalorder %s2692_s27, 4   ;;  %s3583_s21 = smov %s2615_s22 }
 0x553   : > { %s3584_s22 = smov %s2619_s23  ;;  %s3585_s23 = smov %s2703_s30 }
 0x554   : > { %s3586_s24 = smov %s2692_s27  ;;  %18 = sbr.rel (!%p16_p5) target bundleno = 3 (0x3), region = 85 }
 0x559   :  { %2180 = vsyncpa [#allocation3], 1 }
 0x55a   :  { %2182 = vsyncpa [#allocation3 + $0x1], 1 }

</bundles_post_ra>
